<compile_context>
chip_gen: v5e
topology: v5e:2x2
jax: 0.10.0
libtpu: 0.0.40
codegen_flags: <defaults>
</compile_context>

<pallas_src>
import functools

import jax
import jax.numpy as jnp
from jax import lax
from jax.experimental import pallas as pl
from jax.experimental.pallas import tpu as pltpu

GATE_PAD = 128  # one 128-lane block holds all three packed gates [r|z|n]


def _round_up(x, m):
    return (x + m - 1) // m * m


# ----------------------------- Pallas kernel --------------------------------
def gru_classifier_kernel(tok_ref,    # (Bt, S)   int32  token ids (batch-major)
                          table_ref,  # (VP, GP)  f32    one-hot projection table (resident)
                          whh_ref,    # (GP, GP)  f32    packed W_hh^T ([r|z|n] in lanes 0:3H)
                          bhn_ref,    # (1, GP)   f32    b_hn at lanes 2H:3H, else 0
                          wfc_ref,    # (1, GP)   f32    fc weight at lanes 0:H, else 0
                          bfc_ref,    # (1, 1)    f32    fc bias
                          out_ref,    # (Bt, 1)   f32    sigmoid probabilities
                          *, hidden_dim):
    Bt, S = tok_ref.shape
    VP, GP = table_ref.shape
    H = hidden_dim

    toks = tok_ref[...]                                    # (Bt, S) int32
    table = table_ref[...]                                 # (VP, GP) f32
    whh = whh_ref[...]                                     # (GP, GP) f32
    # Hoisted broadcasts / iotas (JAX does not CSE broadcast_in_dim inside the loop).
    bhn = jnp.broadcast_to(bhn_ref[...], (Bt, GP))
    vocab_iota = lax.broadcasted_iota(jnp.int32, (Bt, VP), 1)
    h_mask = lax.broadcasted_iota(jnp.int32, (Bt, GP), 1) < H

    h = jnp.zeros((Bt, GP), jnp.float32)
    # S is small and static -> fully unrolled straight-line code (LLO-visible).
    for t in range(S):
        # In-kernel embedding+input-projection lookup: one-hot(tokens) @ table_proj.
        onehot = (toks[:, t:t + 1] == vocab_iota).astype(jnp.float32)     # (Bt, VP)
        gi = jnp.dot(onehot, table, preferred_element_type=jnp.float32)   # (Bt, GP)
        gh = jnp.dot(h, whh, preferred_element_type=jnp.float32)          # (Bt, GP)
        # PyTorch GRU gate math, packed in one 128-lane block.
        rz = jax.nn.sigmoid(gi + gh)                       # r @ lanes 0:H, z @ H:2H
        r_at_n = pltpu.roll(rz, shift=2 * H, axis=1)       # r -> n lanes (2H:3H)
        n = jnp.tanh(gi + r_at_n * (gh + bhn))             # n valid @ lanes 2H:3H
        z_at_h = pltpu.roll(rz, shift=GP - H, axis=1)      # z -> lanes 0:H
        n_at_h = pltpu.roll(n, shift=GP - 2 * H, axis=1)   # n -> lanes 0:H
        h_new = (1.0 - z_at_h) * n_at_h + z_at_h * h
        h = jnp.where(h_mask, h_new, 0.0)                  # keep padded lanes exactly 0

    # fc(H, 1) as a VPU multiply + lane reduction (padded lanes of h / wfc are zero).
    logits = jnp.sum(h * wfc_ref[...], axis=-1, keepdims=True) + bfc_ref[...]
    # TODO(synk): output is a skinny (B_TILE, 1) store; a lane-dense (1, B_TILE) layout
    # would avoid masked vst, but output bytes are negligible (review: low priority).
    out_ref[...] = jax.nn.sigmoid(logits)


# ----------------------------- wrapper ---------------------------------------
def url_classifier_forward(x_tokens, params):
    """x_tokens: (B, S) int token ids.  Returns (B,) float32 probabilities."""
    B, S = x_tokens.shape
    H = params["hidden_dim"]
    GP = GATE_PAD
    VP = params["table_proj"].shape[0]

    # Batch tiling: aim for >=2 grid steps (shards across v7x's two TensorCores),
    # keep tiles sublane-aligned and capped so VMEM stays tiny even at large B.
    B_TILE = min(256, _round_up(max(pl.cdiv(B, 2), 1), 8))
    B_pad = _round_up(B, B_TILE)

    tokens = x_tokens.astype(jnp.int32)
    if B_pad != B:
        tokens = jnp.pad(tokens, ((0, B_pad - B), (0, 0)))  # pad rows with token 0

    grid = (B_pad // B_TILE,)
    kernel = functools.partial(gru_classifier_kernel, hidden_dim=H)

    out = pl.pallas_call(
        kernel,
        out_shape=jax.ShapeDtypeStruct((B_pad, 1), jnp.float32),
        grid_spec=pltpu.PrefetchScalarGridSpec(
            num_scalar_prefetch=0,
            grid=grid,
            in_specs=[
                pl.BlockSpec((B_TILE, S), lambda b: (b, 0)),   # tokens (per batch tile)
                pl.BlockSpec((VP, GP), lambda b: (0, 0)),      # table_proj (resident)
                pl.BlockSpec((GP, GP), lambda b: (0, 0)),      # whh
                pl.BlockSpec((1, GP), lambda b: (0, 0)),       # bhn
                pl.BlockSpec((1, GP), lambda b: (0, 0)),       # wfc
                pl.BlockSpec((1, 1), lambda b: (0, 0)),        # bfc
            ],
            out_specs=pl.BlockSpec((B_TILE, 1), lambda b: (b, 0)),
        ),
        compiler_params=pltpu.CompilerParams(
            dimension_semantics=("parallel",),   # batch tiles shard over TCs (v7x)
            vmem_limit_bytes=32 * 1024 * 1024,
        ),
    )(tokens, params["table_proj"], params["whh"], params["bhn"],
      params["wfc"], params["bfc"])

    return out[:B, 0]


# ----------------------------- param init ------------------------------------
def init_params(key, vocab_size, embedding_dim=32, hidden_dim=16):
    k = jax.random.split(key, 7)
    V, E, H = vocab_size, embedding_dim, hidden_dim
    GP = GATE_PAD
    VP = _round_up(V + 1, 128)

    embedding = 0.1 * jax.random.normal(k[0], (V + 1, E), jnp.float32)
    embedding = embedding.at[0].set(0.0)                      # padding_idx=0

    # PyTorch GRU params: weight_ih_l0 (3H, E), weight_hh_l0 (3H, H), biases (3H,), [r|z|n]
    w_ih = 0.1 * jax.random.normal(k[1], (3 * H, E), jnp.float32)
    w_hh = 0.1 * jax.random.normal(k[2], (3 * H, H), jnp.float32)
    b_ih = 0.1 * jax.random.normal(k[3], (3 * H,), jnp.float32)
    b_hh = 0.1 * jax.random.normal(k[4], (3 * H,), jnp.float32)
    # nn.Linear(H, 1)
    w_fc = 0.1 * jax.random.normal(k[5], (1, H), jnp.float32)
    b_fc = 0.1 * jax.random.normal(k[6], (1,), jnp.float32)

    # ---- derived kernel-friendly layouts (all f32) ----
    # (1) Fold the input projection and the r/z hidden biases into a lookup table.
    #     b_hn can NOT be folded -- it sits inside the r*(...) term of PyTorch's GRU.
    proj = embedding @ w_ih.T + b_ih                          # (V+1, 3H), [r|z|n]
    proj = proj.at[:, 0:H].add(b_hh[0:H])                     # + b_hr
    proj = proj.at[:, H:2 * H].add(b_hh[H:2 * H])             # + b_hz
    table_proj = jnp.zeros((VP, GP), jnp.float32).at[:V + 1, :3 * H].set(proj)

    # (2) Recurrent weights packed so all three gates share one 128-lane block.
    #     Rows >= H and lanes >= 3H stay zero (padded-lane invariant).
    whh = jnp.zeros((GP, GP), jnp.float32).at[:H, :3 * H].set(w_hh.T)
    bhn = jnp.zeros((1, GP), jnp.float32).at[0, 2 * H:3 * H].set(b_hh[2 * H:3 * H])
    wfc = jnp.zeros((1, GP), jnp.float32).at[0, :H].set(w_fc[0])
    bfc = b_fc.reshape(1, 1)

    return {
        "hidden_dim": H,
        "table_proj": table_proj,
        "whh": whh,
        "bhn": bhn,
        "wfc": wfc,
        "bfc": bfc,
        # raw PyTorch-layout params (kept for the pure-JAX reference check)
        "raw": {"embedding": embedding, "w_ih": w_ih, "w_hh": w_hh,
                "b_ih": b_ih, "b_hh": b_hh, "w_fc": w_fc, "b_fc": b_fc},
    }


# ----------------------------- pure-JAX reference -----------------------------
def reference_forward(x_tokens, raw):
    H = raw["w_hh"].shape[1]
    emb = jnp.take(raw["embedding"], x_tokens, axis=0)        # (B, S, E)

    def cell(h, x_t):
        gi = x_t @ raw["w_ih"].T + raw["b_ih"]
        gh = h @ raw["w_hh"].T + raw["b_hh"]
        r = jax.nn.sigmoid(gi[:, :H] + gh[:, :H])
        z = jax.nn.sigmoid(gi[:, H:2 * H] + gh[:, H:2 * H])
        n = jnp.tanh(gi[:, 2 * H:] + r * gh[:, 2 * H:])
        return (1.0 - z) * n + z * h, None

    h0 = jnp.zeros((x_tokens.shape[0], H), jnp.float32)
    h_final, _ = lax.scan(cell, h0, jnp.transpose(emb, (1, 0, 2)))
    logits = h_final @ raw["w_fc"].T + raw["b_fc"]
    return jax.nn.sigmoid(logits)[:, 0]


# ----------------------------- main -------------------------------------------
if __name__ == "__main__":
    VOCAB_SIZE = 40          # len(char2idx) in the reference script
    EMBED_DIM = 32
    HIDDEN_DIM = 16
    BATCH = 4
    SEQ = 8

    key = jax.random.PRNGKey(0)
    k_param, k_tok = jax.random.split(key)

    params = init_params(k_param, VOCAB_SIZE, EMBED_DIM, HIDDEN_DIM)
    # token ids in [0, VOCAB_SIZE], 0 == padding
    x_tokens = jax.random.randint(k_tok, (BATCH, SEQ), 0, VOCAB_SIZE + 1, jnp.int32)

    probs = url_classifier_forward(x_tokens, params)
    jax.block_until_ready(probs)

    assert probs.shape == (BATCH,)
    assert bool(jnp.all((probs >= 0.0) & (probs <= 1.0)))

    # correctness vs. a pure-JAX f32 GRU reference
    ref = reference_forward(x_tokens, params["raw"])
    assert bool(jnp.allclose(probs, ref, atol=2e-2)), (probs, ref)

    print("KERNEL_OK")
</pallas_src>

<mosaic_0001>
module attributes {stable_mosaic.version = 11 : i64} {
  func.func @gru_classifier_kernel(%arg0: i32, %arg1: memref<8x8xi32, #tpu.memory_space<vmem>>, %arg2: memref<128x128xf32, #tpu.memory_space<vmem>>, %arg3: memref<128x128xf32, #tpu.memory_space<vmem>>, %arg4: memref<1x128xf32, #tpu.memory_space<vmem>>, %arg5: memref<1x128xf32, #tpu.memory_space<vmem>>, %arg6: memref<1x1xf32, #tpu.memory_space<vmem>>, %arg7: memref<8x1xf32, #tpu.memory_space<vmem>>) attributes {dimension_semantics = [#tpu.dimension_semantics<parallel>], iteration_bounds = array<i64: 1>, scalar_prefetch = 0 : i64, scratch_operands = 0 : i64, tpu.core_type = #tpu.core_type<tc>, window_params = [{transform_indices = @transform_0, window_bounds = array<i64: 8, 8>}, {pipeline_mode = #tpu.pipeline_mode<synchronous>, transform_indices = @transform_1, window_bounds = array<i64: 128, 128>}, {pipeline_mode = #tpu.pipeline_mode<synchronous>, transform_indices = @transform_2, window_bounds = array<i64: 128, 128>}, {pipeline_mode = #tpu.pipeline_mode<synchronous>, transform_indices = @transform_3, window_bounds = array<i64: 1, 128>}, {pipeline_mode = #tpu.pipeline_mode<synchronous>, transform_indices = @transform_4, window_bounds = array<i64: 1, 128>}, {pipeline_mode = #tpu.pipeline_mode<synchronous>, transform_indices = @transform_5, window_bounds = array<i64: 1, 1>}, {transform_indices = @transform_6, window_bounds = array<i64: 8, 1>}]} {
    %c0 = arith.constant 0 : index
    %c0_0 = arith.constant 0 : index
    %0 = vector.load %arg1[%c0, %c0_0] : memref<8x8xi32, #tpu.memory_space<vmem>>, vector<8x8xi32>
    %c0_1 = arith.constant 0 : index
    %c0_2 = arith.constant 0 : index
    %1 = vector.load %arg2[%c0_1, %c0_2] : memref<128x128xf32, #tpu.memory_space<vmem>>, vector<128x128xf32>
    %c0_3 = arith.constant 0 : index
    %c0_4 = arith.constant 0 : index
    %2 = vector.load %arg3[%c0_3, %c0_4] : memref<128x128xf32, #tpu.memory_space<vmem>>, vector<128x128xf32>
    %c0_5 = arith.constant 0 : index
    %c0_6 = arith.constant 0 : index
    %3 = vector.load %arg4[%c0_5, %c0_6] : memref<1x128xf32, #tpu.memory_space<vmem>>, vector<1x128xf32>
    %4 = vector.shape_cast %3 : vector<1x128xf32> to vector<1x128xf32>
    %5 = vector.broadcast %4 : vector<1x128xf32> to vector<8x128xf32>
    %6 = tpu.iota {dimensions = array<i32: 1>} : vector<8x128xi32>
    %7 = tpu.iota {dimensions = array<i32: 1>} : vector<8x128xi32>
    %c16_i32 = arith.constant 16 : i32
    %8 = vector.broadcast %c16_i32 : i32 to vector<8x128xi32>
    %9 = arith.cmpi slt, %7, %8 : vector<8x128xi32>
    %cst = arith.constant 0.000000e+00 : f32
    %10 = vector.broadcast %cst : f32 to vector<8x128xf32>
    %11 = vector.extract_strided_slice %0 {offsets = [0, 0], sizes = [8, 1], strides = [1, 1]} : vector<8x8xi32> to vector<8x1xi32>
    %12 = vector.broadcast %11 : vector<8x1xi32> to vector<8x128xi32>
    %13 = arith.cmpi eq, %12, %6 : vector<8x128xi32>
    %14 = arith.extui %13 : vector<8x128xi1> to vector<8x128xi32>
    %15 = arith.sitofp %14 : vector<8x128xi32> to vector<8x128xf32>
    %cst_7 = arith.constant dense<0.000000e+00> : vector<8x128xf32>
    %16 = tpu.matmul %15, %1, %cst_7 {dimension_numbers = #tpu.dot_dimension_numbers<[1], [0], [0], [1], [0, 0, 1, 1], [], []>} : vector<8x128xf32>, vector<128x128xf32>, vector<8x128xf32> -> vector<8x128xf32>
    %cst_8 = arith.constant dense<0.000000e+00> : vector<8x128xf32>
    %17 = tpu.matmul %10, %2, %cst_8 {dimension_numbers = #tpu.dot_dimension_numbers<[1], [0], [0], [1], [0, 0, 1, 1], [], []>} : vector<8x128xf32>, vector<128x128xf32>, vector<8x128xf32> -> vector<8x128xf32>
    %18 = arith.addf %16, %17 : vector<8x128xf32>
    %19 = arith.negf %18 : vector<8x128xf32>
    %20 = math.exp %19 : vector<8x128xf32>
    %cst_9 = arith.constant 1.000000e+00 : f32
    %21 = vector.broadcast %cst_9 : f32 to vector<8x128xf32>
    %22 = arith.addf %21, %20 : vector<8x128xf32>
    %23 = arith.divf %21, %22 : vector<8x128xf32>
    %c32_i32 = arith.constant 32 : i32
    %24 = tpu.dynamic_rotate %23 by %c32_i32 dim 1 : vector<8x128xf32>, i32 -> vector<8x128xf32>
    %25 = arith.addf %17, %5 : vector<8x128xf32>
    %26 = arith.mulf %24, %25 : vector<8x128xf32>
    %27 = arith.addf %16, %26 : vector<8x128xf32>
    %28 = math.tanh %27 : vector<8x128xf32>
    %c112_i32 = arith.constant 112 : i32
    %29 = tpu.dynamic_rotate %23 by %c112_i32 dim 1 : vector<8x128xf32>, i32 -> vector<8x128xf32>
    %c96_i32 = arith.constant 96 : i32
    %30 = tpu.dynamic_rotate %28 by %c96_i32 dim 1 : vector<8x128xf32>, i32 -> vector<8x128xf32>
    %cst_10 = arith.constant 1.000000e+00 : f32
    %31 = vector.broadcast %cst_10 : f32 to vector<8x128xf32>
    %32 = arith.subf %31, %29 : vector<8x128xf32>
    %33 = arith.mulf %32, %30 : vector<8x128xf32>
    %34 = arith.mulf %29, %10 : vector<8x128xf32>
    %35 = arith.addf %33, %34 : vector<8x128xf32>
    %cst_11 = arith.constant 0.000000e+00 : f32
    %36 = vector.broadcast %cst_11 : f32 to vector<8x128xf32>
    %37 = arith.select %9, %35, %36 : vector<8x128xi1>, vector<8x128xf32>
    %38 = vector.extract_strided_slice %0 {offsets = [0, 1], sizes = [8, 1], strides = [1, 1]} : vector<8x8xi32> to vector<8x1xi32>
    %39 = vector.broadcast %38 : vector<8x1xi32> to vector<8x128xi32>
    %40 = arith.cmpi eq, %39, %6 : vector<8x128xi32>
    %41 = arith.extui %40 : vector<8x128xi1> to vector<8x128xi32>
    %42 = arith.sitofp %41 : vector<8x128xi32> to vector<8x128xf32>
    %cst_12 = arith.constant dense<0.000000e+00> : vector<8x128xf32>
    %43 = tpu.matmul %42, %1, %cst_12 {dimension_numbers = #tpu.dot_dimension_numbers<[1], [0], [0], [1], [0, 0, 1, 1], [], []>} : vector<8x128xf32>, vector<128x128xf32>, vector<8x128xf32> -> vector<8x128xf32>
    %cst_13 = arith.constant dense<0.000000e+00> : vector<8x128xf32>
    %44 = tpu.matmul %37, %2, %cst_13 {dimension_numbers = #tpu.dot_dimension_numbers<[1], [0], [0], [1], [0, 0, 1, 1], [], []>} : vector<8x128xf32>, vector<128x128xf32>, vector<8x128xf32> -> vector<8x128xf32>
    %45 = arith.addf %43, %44 : vector<8x128xf32>
    %46 = arith.negf %45 : vector<8x128xf32>
    %47 = math.exp %46 : vector<8x128xf32>
    %cst_14 = arith.constant 1.000000e+00 : f32
    %48 = vector.broadcast %cst_14 : f32 to vector<8x128xf32>
    %49 = arith.addf %48, %47 : vector<8x128xf32>
    %50 = arith.divf %48, %49 : vector<8x128xf32>
    %c32_i32_15 = arith.constant 32 : i32
    %51 = tpu.dynamic_rotate %50 by %c32_i32_15 dim 1 : vector<8x128xf32>, i32 -> vector<8x128xf32>
    %52 = arith.addf %44, %5 : vector<8x128xf32>
    %53 = arith.mulf %51, %52 : vector<8x128xf32>
    %54 = arith.addf %43, %53 : vector<8x128xf32>
    %55 = math.tanh %54 : vector<8x128xf32>
    %c112_i32_16 = arith.constant 112 : i32
    %56 = tpu.dynamic_rotate %50 by %c112_i32_16 dim 1 : vector<8x128xf32>, i32 -> vector<8x128xf32>
    %c96_i32_17 = arith.constant 96 : i32
    %57 = tpu.dynamic_rotate %55 by %c96_i32_17 dim 1 : vector<8x128xf32>, i32 -> vector<8x128xf32>
    %cst_18 = arith.constant 1.000000e+00 : f32
    %58 = vector.broadcast %cst_18 : f32 to vector<8x128xf32>
    %59 = arith.subf %58, %56 : vector<8x128xf32>
    %60 = arith.mulf %59, %57 : vector<8x128xf32>
    %61 = arith.mulf %56, %37 : vector<8x128xf32>
    %62 = arith.addf %60, %61 : vector<8x128xf32>
    %cst_19 = arith.constant 0.000000e+00 : f32
    %63 = vector.broadcast %cst_19 : f32 to vector<8x128xf32>
    %64 = arith.select %9, %62, %63 : vector<8x128xi1>, vector<8x128xf32>
    %65 = vector.extract_strided_slice %0 {offsets = [0, 2], sizes = [8, 1], strides = [1, 1]} : vector<8x8xi32> to vector<8x1xi32>
    %66 = vector.broadcast %65 : vector<8x1xi32> to vector<8x128xi32>
    %67 = arith.cmpi eq, %66, %6 : vector<8x128xi32>
    %68 = arith.extui %67 : vector<8x128xi1> to vector<8x128xi32>
    %69 = arith.sitofp %68 : vector<8x128xi32> to vector<8x128xf32>
    %cst_20 = arith.constant dense<0.000000e+00> : vector<8x128xf32>
    %70 = tpu.matmul %69, %1, %cst_20 {dimension_numbers = #tpu.dot_dimension_numbers<[1], [0], [0], [1], [0, 0, 1, 1], [], []>} : vector<8x128xf32>, vector<128x128xf32>, vector<8x128xf32> -> vector<8x128xf32>
    %cst_21 = arith.constant dense<0.000000e+00> : vector<8x128xf32>
    %71 = tpu.matmul %64, %2, %cst_21 {dimension_numbers = #tpu.dot_dimension_numbers<[1], [0], [0], [1], [0, 0, 1, 1], [], []>} : vector<8x128xf32>, vector<128x128xf32>, vector<8x128xf32> -> vector<8x128xf32>
    %72 = arith.addf %70, %71 : vector<8x128xf32>
    %73 = arith.negf %72 : vector<8x128xf32>
    %74 = math.exp %73 : vector<8x128xf32>
    %cst_22 = arith.constant 1.000000e+00 : f32
    %75 = vector.broadcast %cst_22 : f32 to vector<8x128xf32>
    %76 = arith.addf %75, %74 : vector<8x128xf32>
    %77 = arith.divf %75, %76 : vector<8x128xf32>
    %c32_i32_23 = arith.constant 32 : i32
    %78 = tpu.dynamic_rotate %77 by %c32_i32_23 dim 1 : vector<8x128xf32>, i32 -> vector<8x128xf32>
    %79 = arith.addf %71, %5 : vector<8x128xf32>
    %80 = arith.mulf %78, %79 : vector<8x128xf32>
    %81 = arith.addf %70, %80 : vector<8x128xf32>
    %82 = math.tanh %81 : vector<8x128xf32>
    %c112_i32_24 = arith.constant 112 : i32
    %83 = tpu.dynamic_rotate %77 by %c112_i32_24 dim 1 : vector<8x128xf32>, i32 -> vector<8x128xf32>
    %c96_i32_25 = arith.constant 96 : i32
    %84 = tpu.dynamic_rotate %82 by %c96_i32_25 dim 1 : vector<8x128xf32>, i32 -> vector<8x128xf32>
    %cst_26 = arith.constant 1.000000e+00 : f32
    %85 = vector.broadcast %cst_26 : f32 to vector<8x128xf32>
    %86 = arith.subf %85, %83 : vector<8x128xf32>
    %87 = arith.mulf %86, %84 : vector<8x128xf32>
    %88 = arith.mulf %83, %64 : vector<8x128xf32>
    %89 = arith.addf %87, %88 : vector<8x128xf32>
    %cst_27 = arith.constant 0.000000e+00 : f32
    %90 = vector.broadcast %cst_27 : f32 to vector<8x128xf32>
    %91 = arith.select %9, %89, %90 : vector<8x128xi1>, vector<8x128xf32>
    %92 = vector.extract_strided_slice %0 {offsets = [0, 3], sizes = [8, 1], strides = [1, 1]} : vector<8x8xi32> to vector<8x1xi32>
    %93 = vector.broadcast %92 : vector<8x1xi32> to vector<8x128xi32>
    %94 = arith.cmpi eq, %93, %6 : vector<8x128xi32>
    %95 = arith.extui %94 : vector<8x128xi1> to vector<8x128xi32>
    %96 = arith.sitofp %95 : vector<8x128xi32> to vector<8x128xf32>
    %cst_28 = arith.constant dense<0.000000e+00> : vector<8x128xf32>
    %97 = tpu.matmul %96, %1, %cst_28 {dimension_numbers = #tpu.dot_dimension_numbers<[1], [0], [0], [1], [0, 0, 1, 1], [], []>} : vector<8x128xf32>, vector<128x128xf32>, vector<8x128xf32> -> vector<8x128xf32>
    %cst_29 = arith.constant dense<0.000000e+00> : vector<8x128xf32>
    %98 = tpu.matmul %91, %2, %cst_29 {dimension_numbers = #tpu.dot_dimension_numbers<[1], [0], [0], [1], [0, 0, 1, 1], [], []>} : vector<8x128xf32>, vector<128x128xf32>, vector<8x128xf32> -> vector<8x128xf32>
    %99 = arith.addf %97, %98 : vector<8x128xf32>
    %100 = arith.negf %99 : vector<8x128xf32>
    %101 = math.exp %100 : vector<8x128xf32>
    %cst_30 = arith.constant 1.000000e+00 : f32
    %102 = vector.broadcast %cst_30 : f32 to vector<8x128xf32>
    %103 = arith.addf %102, %101 : vector<8x128xf32>
    %104 = arith.divf %102, %103 : vector<8x128xf32>
    %c32_i32_31 = arith.constant 32 : i32
    %105 = tpu.dynamic_rotate %104 by %c32_i32_31 dim 1 : vector<8x128xf32>, i32 -> vector<8x128xf32>
    %106 = arith.addf %98, %5 : vector<8x128xf32>
    %107 = arith.mulf %105, %106 : vector<8x128xf32>
    %108 = arith.addf %97, %107 : vector<8x128xf32>
    %109 = math.tanh %108 : vector<8x128xf32>
    %c112_i32_32 = arith.constant 112 : i32
    %110 = tpu.dynamic_rotate %104 by %c112_i32_32 dim 1 : vector<8x128xf32>, i32 -> vector<8x128xf32>
    %c96_i32_33 = arith.constant 96 : i32
    %111 = tpu.dynamic_rotate %109 by %c96_i32_33 dim 1 : vector<8x128xf32>, i32 -> vector<8x128xf32>
    %cst_34 = arith.constant 1.000000e+00 : f32
    %112 = vector.broadcast %cst_34 : f32 to vector<8x128xf32>
    %113 = arith.subf %112, %110 : vector<8x128xf32>
    %114 = arith.mulf %113, %111 : vector<8x128xf32>
    %115 = arith.mulf %110, %91 : vector<8x128xf32>
    %116 = arith.addf %114, %115 : vector<8x128xf32>
    %cst_35 = arith.constant 0.000000e+00 : f32
    %117 = vector.broadcast %cst_35 : f32 to vector<8x128xf32>
    %118 = arith.select %9, %116, %117 : vector<8x128xi1>, vector<8x128xf32>
    %119 = vector.extract_strided_slice %0 {offsets = [0, 4], sizes = [8, 1], strides = [1, 1]} : vector<8x8xi32> to vector<8x1xi32>
    %120 = vector.broadcast %119 : vector<8x1xi32> to vector<8x128xi32>
    %121 = arith.cmpi eq, %120, %6 : vector<8x128xi32>
    %122 = arith.extui %121 : vector<8x128xi1> to vector<8x128xi32>
    %123 = arith.sitofp %122 : vector<8x128xi32> to vector<8x128xf32>
    %cst_36 = arith.constant dense<0.000000e+00> : vector<8x128xf32>
    %124 = tpu.matmul %123, %1, %cst_36 {dimension_numbers = #tpu.dot_dimension_numbers<[1], [0], [0], [1], [0, 0, 1, 1], [], []>} : vector<8x128xf32>, vector<128x128xf32>, vector<8x128xf32> -> vector<8x128xf32>
    %cst_37 = arith.constant dense<0.000000e+00> : vector<8x128xf32>
    %125 = tpu.matmul %118, %2, %cst_37 {dimension_numbers = #tpu.dot_dimension_numbers<[1], [0], [0], [1], [0, 0, 1, 1], [], []>} : vector<8x128xf32>, vector<128x128xf32>, vector<8x128xf32> -> vector<8x128xf32>
    %126 = arith.addf %124, %125 : vector<8x128xf32>
    %127 = arith.negf %126 : vector<8x128xf32>
    %128 = math.exp %127 : vector<8x128xf32>
    %cst_38 = arith.constant 1.000000e+00 : f32
    %129 = vector.broadcast %cst_38 : f32 to vector<8x128xf32>
    %130 = arith.addf %129, %128 : vector<8x128xf32>
    %131 = arith.divf %129, %130 : vector<8x128xf32>
    %c32_i32_39 = arith.constant 32 : i32
    %132 = tpu.dynamic_rotate %131 by %c32_i32_39 dim 1 : vector<8x128xf32>, i32 -> vector<8x128xf32>
    %133 = arith.addf %125, %5 : vector<8x128xf32>
    %134 = arith.mulf %132, %133 : vector<8x128xf32>
    %135 = arith.addf %124, %134 : vector<8x128xf32>
    %136 = math.tanh %135 : vector<8x128xf32>
    %c112_i32_40 = arith.constant 112 : i32
    %137 = tpu.dynamic_rotate %131 by %c112_i32_40 dim 1 : vector<8x128xf32>, i32 -> vector<8x128xf32>
    %c96_i32_41 = arith.constant 96 : i32
    %138 = tpu.dynamic_rotate %136 by %c96_i32_41 dim 1 : vector<8x128xf32>, i32 -> vector<8x128xf32>
    %cst_42 = arith.constant 1.000000e+00 : f32
    %139 = vector.broadcast %cst_42 : f32 to vector<8x128xf32>
    %140 = arith.subf %139, %137 : vector<8x128xf32>
    %141 = arith.mulf %140, %138 : vector<8x128xf32>
    %142 = arith.mulf %137, %118 : vector<8x128xf32>
    %143 = arith.addf %141, %142 : vector<8x128xf32>
    %cst_43 = arith.constant 0.000000e+00 : f32
    %144 = vector.broadcast %cst_43 : f32 to vector<8x128xf32>
    %145 = arith.select %9, %143, %144 : vector<8x128xi1>, vector<8x128xf32>
    %146 = vector.extract_strided_slice %0 {offsets = [0, 5], sizes = [8, 1], strides = [1, 1]} : vector<8x8xi32> to vector<8x1xi32>
    %147 = vector.broadcast %146 : vector<8x1xi32> to vector<8x128xi32>
    %148 = arith.cmpi eq, %147, %6 : vector<8x128xi32>
    %149 = arith.extui %148 : vector<8x128xi1> to vector<8x128xi32>
    %150 = arith.sitofp %149 : vector<8x128xi32> to vector<8x128xf32>
    %cst_44 = arith.constant dense<0.000000e+00> : vector<8x128xf32>
    %151 = tpu.matmul %150, %1, %cst_44 {dimension_numbers = #tpu.dot_dimension_numbers<[1], [0], [0], [1], [0, 0, 1, 1], [], []>} : vector<8x128xf32>, vector<128x128xf32>, vector<8x128xf32> -> vector<8x128xf32>
    %cst_45 = arith.constant dense<0.000000e+00> : vector<8x128xf32>
    %152 = tpu.matmul %145, %2, %cst_45 {dimension_numbers = #tpu.dot_dimension_numbers<[1], [0], [0], [1], [0, 0, 1, 1], [], []>} : vector<8x128xf32>, vector<128x128xf32>, vector<8x128xf32> -> vector<8x128xf32>
    %153 = arith.addf %151, %152 : vector<8x128xf32>
    %154 = arith.negf %153 : vector<8x128xf32>
    %155 = math.exp %154 : vector<8x128xf32>
    %cst_46 = arith.constant 1.000000e+00 : f32
    %156 = vector.broadcast %cst_46 : f32 to vector<8x128xf32>
    %157 = arith.addf %156, %155 : vector<8x128xf32>
    %158 = arith.divf %156, %157 : vector<8x128xf32>
    %c32_i32_47 = arith.constant 32 : i32
    %159 = tpu.dynamic_rotate %158 by %c32_i32_47 dim 1 : vector<8x128xf32>, i32 -> vector<8x128xf32>
    %160 = arith.addf %152, %5 : vector<8x128xf32>
    %161 = arith.mulf %159, %160 : vector<8x128xf32>
    %162 = arith.addf %151, %161 : vector<8x128xf32>
    %163 = math.tanh %162 : vector<8x128xf32>
    %c112_i32_48 = arith.constant 112 : i32
    %164 = tpu.dynamic_rotate %158 by %c112_i32_48 dim 1 : vector<8x128xf32>, i32 -> vector<8x128xf32>
    %c96_i32_49 = arith.constant 96 : i32
    %165 = tpu.dynamic_rotate %163 by %c96_i32_49 dim 1 : vector<8x128xf32>, i32 -> vector<8x128xf32>
    %cst_50 = arith.constant 1.000000e+00 : f32
    %166 = vector.broadcast %cst_50 : f32 to vector<8x128xf32>
    %167 = arith.subf %166, %164 : vector<8x128xf32>
    %168 = arith.mulf %167, %165 : vector<8x128xf32>
    %169 = arith.mulf %164, %145 : vector<8x128xf32>
    %170 = arith.addf %168, %169 : vector<8x128xf32>
    %cst_51 = arith.constant 0.000000e+00 : f32
    %171 = vector.broadcast %cst_51 : f32 to vector<8x128xf32>
    %172 = arith.select %9, %170, %171 : vector<8x128xi1>, vector<8x128xf32>
    %173 = vector.extract_strided_slice %0 {offsets = [0, 6], sizes = [8, 1], strides = [1, 1]} : vector<8x8xi32> to vector<8x1xi32>
    %174 = vector.broadcast %173 : vector<8x1xi32> to vector<8x128xi32>
    %175 = arith.cmpi eq, %174, %6 : vector<8x128xi32>
    %176 = arith.extui %175 : vector<8x128xi1> to vector<8x128xi32>
    %177 = arith.sitofp %176 : vector<8x128xi32> to vector<8x128xf32>
    %cst_52 = arith.constant dense<0.000000e+00> : vector<8x128xf32>
    %178 = tpu.matmul %177, %1, %cst_52 {dimension_numbers = #tpu.dot_dimension_numbers<[1], [0], [0], [1], [0, 0, 1, 1], [], []>} : vector<8x128xf32>, vector<128x128xf32>, vector<8x128xf32> -> vector<8x128xf32>
    %cst_53 = arith.constant dense<0.000000e+00> : vector<8x128xf32>
    %179 = tpu.matmul %172, %2, %cst_53 {dimension_numbers = #tpu.dot_dimension_numbers<[1], [0], [0], [1], [0, 0, 1, 1], [], []>} : vector<8x128xf32>, vector<128x128xf32>, vector<8x128xf32> -> vector<8x128xf32>
    %180 = arith.addf %178, %179 : vector<8x128xf32>
    %181 = arith.negf %180 : vector<8x128xf32>
    %182 = math.exp %181 : vector<8x128xf32>
    %cst_54 = arith.constant 1.000000e+00 : f32
    %183 = vector.broadcast %cst_54 : f32 to vector<8x128xf32>
    %184 = arith.addf %183, %182 : vector<8x128xf32>
    %185 = arith.divf %183, %184 : vector<8x128xf32>
    %c32_i32_55 = arith.constant 32 : i32
    %186 = tpu.dynamic_rotate %185 by %c32_i32_55 dim 1 : vector<8x128xf32>, i32 -> vector<8x128xf32>
    %187 = arith.addf %179, %5 : vector<8x128xf32>
    %188 = arith.mulf %186, %187 : vector<8x128xf32>
    %189 = arith.addf %178, %188 : vector<8x128xf32>
    %190 = math.tanh %189 : vector<8x128xf32>
    %c112_i32_56 = arith.constant 112 : i32
    %191 = tpu.dynamic_rotate %185 by %c112_i32_56 dim 1 : vector<8x128xf32>, i32 -> vector<8x128xf32>
    %c96_i32_57 = arith.constant 96 : i32
    %192 = tpu.dynamic_rotate %190 by %c96_i32_57 dim 1 : vector<8x128xf32>, i32 -> vector<8x128xf32>
    %cst_58 = arith.constant 1.000000e+00 : f32
    %193 = vector.broadcast %cst_58 : f32 to vector<8x128xf32>
    %194 = arith.subf %193, %191 : vector<8x128xf32>
    %195 = arith.mulf %194, %192 : vector<8x128xf32>
    %196 = arith.mulf %191, %172 : vector<8x128xf32>
    %197 = arith.addf %195, %196 : vector<8x128xf32>
    %cst_59 = arith.constant 0.000000e+00 : f32
    %198 = vector.broadcast %cst_59 : f32 to vector<8x128xf32>
    %199 = arith.select %9, %197, %198 : vector<8x128xi1>, vector<8x128xf32>
    %200 = vector.extract_strided_slice %0 {offsets = [0, 7], sizes = [8, 1], strides = [1, 1]} : vector<8x8xi32> to vector<8x1xi32>
    %201 = vector.broadcast %200 : vector<8x1xi32> to vector<8x128xi32>
    %202 = arith.cmpi eq, %201, %6 : vector<8x128xi32>
    %203 = arith.extui %202 : vector<8x128xi1> to vector<8x128xi32>
    %204 = arith.sitofp %203 : vector<8x128xi32> to vector<8x128xf32>
    %cst_60 = arith.constant dense<0.000000e+00> : vector<8x128xf32>
    %205 = tpu.matmul %204, %1, %cst_60 {dimension_numbers = #tpu.dot_dimension_numbers<[1], [0], [0], [1], [0, 0, 1, 1], [], []>} : vector<8x128xf32>, vector<128x128xf32>, vector<8x128xf32> -> vector<8x128xf32>
    %cst_61 = arith.constant dense<0.000000e+00> : vector<8x128xf32>
    %206 = tpu.matmul %199, %2, %cst_61 {dimension_numbers = #tpu.dot_dimension_numbers<[1], [0], [0], [1], [0, 0, 1, 1], [], []>} : vector<8x128xf32>, vector<128x128xf32>, vector<8x128xf32> -> vector<8x128xf32>
    %207 = arith.addf %205, %206 : vector<8x128xf32>
    %208 = arith.negf %207 : vector<8x128xf32>
    %209 = math.exp %208 : vector<8x128xf32>
    %cst_62 = arith.constant 1.000000e+00 : f32
    %210 = vector.broadcast %cst_62 : f32 to vector<8x128xf32>
    %211 = arith.addf %210, %209 : vector<8x128xf32>
    %212 = arith.divf %210, %211 : vector<8x128xf32>
    %c32_i32_63 = arith.constant 32 : i32
    %213 = tpu.dynamic_rotate %212 by %c32_i32_63 dim 1 : vector<8x128xf32>, i32 -> vector<8x128xf32>
    %214 = arith.addf %206, %5 : vector<8x128xf32>
    %215 = arith.mulf %213, %214 : vector<8x128xf32>
    %216 = arith.addf %205, %215 : vector<8x128xf32>
    %217 = math.tanh %216 : vector<8x128xf32>
    %c112_i32_64 = arith.constant 112 : i32
    %218 = tpu.dynamic_rotate %212 by %c112_i32_64 dim 1 : vector<8x128xf32>, i32 -> vector<8x128xf32>
    %c96_i32_65 = arith.constant 96 : i32
    %219 = tpu.dynamic_rotate %217 by %c96_i32_65 dim 1 : vector<8x128xf32>, i32 -> vector<8x128xf32>
    %cst_66 = arith.constant 1.000000e+00 : f32
    %220 = vector.broadcast %cst_66 : f32 to vector<8x128xf32>
    %221 = arith.subf %220, %218 : vector<8x128xf32>
    %222 = arith.mulf %221, %219 : vector<8x128xf32>
    %223 = arith.mulf %218, %199 : vector<8x128xf32>
    %224 = arith.addf %222, %223 : vector<8x128xf32>
    %cst_67 = arith.constant 0.000000e+00 : f32
    %225 = vector.broadcast %cst_67 : f32 to vector<8x128xf32>
    %226 = arith.select %9, %224, %225 : vector<8x128xi1>, vector<8x128xf32>
    %c0_68 = arith.constant 0 : index
    %c0_69 = arith.constant 0 : index
    %227 = vector.load %arg5[%c0_68, %c0_69] : memref<1x128xf32, #tpu.memory_space<vmem>>, vector<1x128xf32>
    %228 = vector.broadcast %227 : vector<1x128xf32> to vector<8x128xf32>
    %229 = arith.mulf %226, %228 : vector<8x128xf32>
    %cst_70 = arith.constant dense<0.000000e+00> : vector<8xf32>
    %230 = vector.multi_reduction <add>, %229, %cst_70 [1] : vector<8x128xf32> to vector<8xf32>
    %231 = vector.shape_cast %230 : vector<8xf32> to vector<8x1xf32>
    %c0_71 = arith.constant 0 : index
    %c0_72 = arith.constant 0 : index
    %232 = vector.load %arg6[%c0_71, %c0_72] : memref<1x1xf32, #tpu.memory_space<vmem>>, vector<1x1xf32>
    %233 = vector.broadcast %232 : vector<1x1xf32> to vector<8x1xf32>
    %234 = arith.addf %231, %233 : vector<8x1xf32>
    %235 = arith.negf %234 : vector<8x1xf32>
    %236 = math.exp %235 : vector<8x1xf32>
    %cst_73 = arith.constant 1.000000e+00 : f32
    %237 = vector.broadcast %cst_73 : f32 to vector<8x1xf32>
    %238 = arith.addf %237, %236 : vector<8x1xf32>
    %239 = arith.divf %237, %238 : vector<8x1xf32>
    %c0_74 = arith.constant 0 : index
    %c0_75 = arith.constant 0 : index
    %240 = vector.load %arg7[%c0_74, %c0_75] : memref<8x1xf32, #tpu.memory_space<vmem>>, vector<8x1xf32>
    tpu.vector_store %arg7[%c0_74, %c0_75], %239 {strides = array<i32>} : memref<8x1xf32, #tpu.memory_space<vmem>>, vector<8x1xf32>,
    return
  }
  func.func @transform_0(%arg0: i32) -> (i32, i32) {
    %c0_i32 = arith.constant 0 : i32
    %c0_i32_0 = arith.constant 0 : i32
    return %arg0, %c0_i32 : i32, i32
  }
  func.func @transform_1(%arg0: i32) -> (i32, i32) {
    %c0_i32 = arith.constant 0 : i32
    %c0_i32_0 = arith.constant 0 : i32
    %c0_i32_1 = arith.constant 0 : i32
    return %c0_i32, %c0_i32_0 : i32, i32
  }
  func.func @transform_2(%arg0: i32) -> (i32, i32) {
    %c0_i32 = arith.constant 0 : i32
    %c0_i32_0 = arith.constant 0 : i32
    %c0_i32_1 = arith.constant 0 : i32
    return %c0_i32, %c0_i32_0 : i32, i32
  }
  func.func @transform_3(%arg0: i32) -> (i32, i32) {
    %c0_i32 = arith.constant 0 : i32
    %c0_i32_0 = arith.constant 0 : i32
    %c0_i32_1 = arith.constant 0 : i32
    return %c0_i32, %c0_i32_0 : i32, i32
  }
  func.func @transform_4(%arg0: i32) -> (i32, i32) {
    %c0_i32 = arith.constant 0 : i32
    %c0_i32_0 = arith.constant 0 : i32
    %c0_i32_1 = arith.constant 0 : i32
    return %c0_i32, %c0_i32_0 : i32, i32
  }
  func.func @transform_5(%arg0: i32) -> (i32, i32) {
    %c0_i32 = arith.constant 0 : i32
    %c0_i32_0 = arith.constant 0 : i32
    %c0_i32_1 = arith.constant 0 : i32
    return %c0_i32, %c0_i32_0 : i32, i32
  }
  func.func @transform_6(%arg0: i32) -> (i32, i32) {
    %c0_i32 = arith.constant 0 : i32
    %c0_i32_0 = arith.constant 0 : i32
    return %arg0, %c0_i32 : i32, i32
  }
}

</mosaic_0001>

<bundles_post_ra>
// kernel: tpu_custom_call.1
= control target key start
LH: loop header
LB: loop body
LE: loop exit
PB: predicated region body
PF: predicated region fallthrough
CT: control target
= control target key end

     0   :  { %s1480_s0 = inlined_call_operand.hbm [shape: s32[8,8], index: 0, kind: input, shape index: {}]   ;;  %s1481_s1 = inlined_call_operand.hbm [shape: f32[128,128], index: 1, kind: input, shape index: {}]   ;;  %s1482_s2 = inlined_call_operand.hbm [shape: f32[128,128], index: 2, kind: input, shape index: {}]   ;;  %s1483_s3 = inlined_call_operand.vmem [shape: f32[1,128], index: 3, kind: input, shape index: {}]   ;;  %s1484_s4 = inlined_call_operand.vmem [shape: f32[1,128], index: 4, kind: input, shape index: {}]   ;;  %s1485_s5 = inlined_call_operand.<no memory space> [shape: f32[1,1], index: 5, kind: input, shape index: {}]   ;;  %s1486_s6 = inlined_call_operand.vmem [shape: f32[8,1], index: 6, kind: output, shape index: {}]  }
   0x1   :  { %v11_v0 = vstv %s1485_s5 }
   0x2   :  { %12 = vst [vmem:[#allocation2] sm:$0x1] %v11_v0 }
   0x3   :  { %13 = vsyncpa [#allocation4], 0 }
   0x4   :  { %14 = vsyncpa [#allocation6], 0  ;;  %s30_s25 = sshll.u32 %s1481_s1, 4  ;;  %s987_s26 = smov [#allocation5]   ;;  %s31_s25 = int_to_ptr.hbm [resolvable:$true] %s30_s25 }
   0x5   :  { %s32_s27 = sshll.u32 %s987_s26, 4  ;;  %s20_s30 = sshll.u32 %s1480_s0, 4  ;;  %s33_s27 = int_to_ptr.vmem [resolvable:$true] %s32_s27  ;;  %s21_s30 = int_to_ptr.hbm [resolvable:$true] %s20_s30 }
   0x6   :  { %s988_s7 = smov 128   ;;  %s989_s8 = smov 8  }
   0x7   :  { %38 = dma.hbm_to_vmem [thread:$0]  %s31_s25, 2048, %s33_s27, [#allocation6], %s988_s7, %s988_s7, %s989_s8  }
   0x8   :  { %s990_s5 = smov [#allocation3]   ;;  %s43_s12 = sshll.u32 %s1482_s2, 4  ;;  %s44_s12 = int_to_ptr.hbm [resolvable:$true] %s43_s12 }
   0x9   :  { %s22_s9 = sshll.u32 %s990_s5, 4  ;;  %s991_s1 = smov [#allocation7]   ;;  %s23_s9 = int_to_ptr.vmem [resolvable:$true] %s22_s9 }
   0xa   :  { %25 = dma.hbm_to_vmem [thread:$0]  %s21_s30, 128, %s23_s9, [#allocation4]  }
   0xb   :  { %s45_s13 = sshll.u32 %s991_s1, 4  ;;  %s46_s13 = int_to_ptr.vmem [resolvable:$true] %s45_s13 }
   0xc   :  { %51 = dma.hbm_to_vmem [thread:$0]  %s44_s12, 2048, %s46_s13, [#allocation6], %s988_s7, %s988_s7, %s989_s8  }
   0xd   :  { %983 = dma.done.wait [#allocation4], 128  }
   0xe   :  { %984 = vsyncadd [#allocation4], 4294967168 }
   0xf   :  { %985 = dma.done.wait [#allocation6], 4096  }
  0x10   :  { %986 = vsyncadd [#allocation6], 4294963200  ;;  %v992_v1 = vmov 0   ;;  %v1052_v2 = vld [vmem:[#allocation3] sm:$0xff]  ;;  %v1060_v5 = vld [vmem:[#allocation5 + $0x70] sm:$0xff]  ;;  %v993_v35 = vmov 0.0   ;;  %v107_v36 = vlaneseq }
  0x11   :  { %847 = vset.pattern.permute.xlu0 %v992_v1  ;;  %v1054_v3 = vld [vmem:[#allocation5 + $0x78] sm:$0xff]  ;;  %v1062_v6 = vld [vmem:[#allocation7 + $0x70] sm:$0xff]  ;;  %v1065_v7 = vld [vmem:[#allocation5 + $0x68] sm:$0xff]  ;;  %v994_v39 = vmov 1.0   ;;  %s995_s0 = smov 112   ;;  %s996_s2 = smov 32  }
  0x12   :  { %v1056_v4 = vld [vmem:[#allocation7 + $0x78] sm:$0xff]  ;;  %111 = vperm.xlu0 %847, %v1052_v2   ;;  %116 = vmatpush.msra.mxu0 %v1054_v3  ;;  %v1069_v8 = vld [vmem:[#allocation7 + $0x68] sm:$0xff]  ;;  %v1073_v9 = vld [vmem:[#allocation5 + $0x60] sm:$0xff]  ;;  %v1234_v37 = vand.u32 127, %v107_v36  ;;  %v997_v56 = vmov 1   ;;  %s998_s16 = smov 96  }
  0x13   :  { %136 = vmatpush.msra.mxu1 %v1056_v4  ;;  %197 = vmatpush.msra.mxu2 %v1054_v3  ;;  %v1077_v10 = vld [vmem:[#allocation7 + $0x60] sm:$0xff]  ;;  %v1081_v11 = vld [vmem:[#allocation5 + $0x58] sm:$0xff]  ;;  %v1089_v13 = vld [vmem:[#allocation5 + $0x50] sm:$0xff] }
  0x14   :  { %117 = vmatpush.msra.mxu0 %v1060_v5  ;;  %217 = vmatpush.msra.mxu3 %v1056_v4  ;;  %v1085_v12 = vld [vmem:[#allocation7 + $0x58] sm:$0xff]  ;;  %v1093_v14 = vld [vmem:[#allocation7 + $0x50] sm:$0xff]  ;;  %v1097_v15 = vld [vmem:[#allocation5 + $0x48] sm:$0xff]  ;;  %vm109_vm6 = vcmp.lt.s32.totalorder %v1234_v37, 16 }
  0x15   :  { %137 = vmatpush.msra.mxu1 %v1062_v6  ;;  %198 = vmatpush.msra.mxu2 %v1060_v5  ;;  %v1101_v16 = vld [vmem:[#allocation7 + $0x48] sm:$0xff]  ;;  %v1105_v17 = vld [vmem:[#allocation5 + $0x40] sm:$0xff]  ;;  %v1113_v19 = vld [vmem:[#allocation5 + $0x38] sm:$0xff] }
  0x16   :  { %118 = vmatpush.msra.mxu0 %v1065_v7  ;;  %218 = vmatpush.msra.mxu3 %v1062_v6  ;;  %v1109_v18 = vld [vmem:[#allocation7 + $0x40] sm:$0xff]  ;;  %v1117_v20 = vld [vmem:[#allocation7 + $0x38] sm:$0xff]  ;;  %v1121_v21 = vld [vmem:[#allocation5 + $0x30] sm:$0xff] }
  0x17   :  { %138 = vmatpush.msra.mxu1 %v1069_v8  ;;  %199 = vmatpush.msra.mxu2 %v1065_v7  ;;  %v1125_v22 = vld [vmem:[#allocation7 + $0x30] sm:$0xff]  ;;  %v1129_v23 = vld [vmem:[#allocation5 + $0x28] sm:$0xff]  ;;  %v1137_v25 = vld [vmem:[#allocation5 + $0x20] sm:$0xff] }
  0x18   :  { %119 = vmatpush.msra.mxu0 %v1073_v9  ;;  %219 = vmatpush.msra.mxu3 %v1069_v8  ;;  %v1133_v24 = vld [vmem:[#allocation7 + $0x28] sm:$0xff]  ;;  %v1141_v26 = vld [vmem:[#allocation7 + $0x20] sm:$0xff]  ;;  %v1145_v27 = vld [vmem:[#allocation5 + $0x18] sm:$0xff] }
  0x19   :  { %139 = vmatpush.msra.mxu1 %v1077_v10  ;;  %200 = vmatpush.msra.mxu2 %v1073_v9  ;;  %v1149_v28 = vld [vmem:[#allocation7 + $0x18] sm:$0xff]  ;;  %v1153_v29 = vld [vmem:[#allocation5 + $0x10] sm:$0xff]  ;;  %v1161_v31 = vld [vmem:[#allocation5 + $0x8] sm:$0xff] }
  0x1a   :  { %120 = vmatpush.msra.mxu0 %v1081_v11  ;;  %220 = vmatpush.msra.mxu3 %v1077_v10  ;;  %v1157_v30 = vld [vmem:[#allocation7 + $0x10] sm:$0xff]  ;;  %v1165_v32 = vld [vmem:[#allocation7 + $0x8] sm:$0xff]  ;;  %v1175_v33 = vld [vmem:[#allocation5] sm:$0xff] }
  0x1b   :  { %140 = vmatpush.msra.mxu1 %v1085_v12  ;;  %201 = vmatpush.msra.mxu2 %v1081_v11  ;;  %v1177_v34 = vld [vmem:[#allocation7] sm:$0xff]  ;;  %v1289_v57 = vld [vmem:[%s1483_s3] ss:$0 sm:$0xff] }
  0x1c   :  { %121 = vmatpush.msra.mxu0 %v1089_v13  ;;  %221 = vmatpush.msra.mxu3 %v1085_v12 }
  0x1d   :  { %141 = vmatpush.msra.mxu1 %v1093_v14  ;;  %202 = vmatpush.msra.mxu2 %v1089_v13 }
  0x1e   :  { %122 = vmatpush.msra.mxu0 %v1097_v15  ;;  %222 = vmatpush.msra.mxu3 %v1093_v14 }
  0x1f   :  { %142 = vmatpush.msra.mxu1 %v1101_v16  ;;  %203 = vmatpush.msra.mxu2 %v1097_v15 }
  0x20   :  { %123 = vmatpush.msra.mxu0 %v1105_v17  ;;  %223 = vmatpush.msra.mxu3 %v1101_v16 }
  0x21   :  { %143 = vmatpush.msra.mxu1 %v1109_v18  ;;  %204 = vmatpush.msra.mxu2 %v1105_v17 }
  0x22   :  { %124 = vmatpush.msra.mxu0 %v1113_v19  ;;  %224 = vmatpush.msra.mxu3 %v1109_v18 }
  0x23   :  { %144 = vmatpush.msra.mxu1 %v1117_v20  ;;  %205 = vmatpush.msra.mxu2 %v1113_v19 }
  0x24   :  { %125 = vmatpush.msra.mxu0 %v1121_v21  ;;  %225 = vmatpush.msra.mxu3 %v1117_v20 }
  0x25   :  { %145 = vmatpush.msra.mxu1 %v1125_v22  ;;  %206 = vmatpush.msra.mxu2 %v1121_v21 }
  0x26   :  { %126 = vmatpush.msra.mxu0 %v1129_v23  ;;  %226 = vmatpush.msra.mxu3 %v1125_v22 }
  0x27   :  { %146 = vmatpush.msra.mxu1 %v1133_v24  ;;  %207 = vmatpush.msra.mxu2 %v1129_v23 }
  0x28   :  { %127 = vmatpush.msra.mxu0 %v1137_v25  ;;  %227 = vmatpush.msra.mxu3 %v1133_v24 }
  0x29   :  { %147 = vmatpush.msra.mxu1 %v1141_v26  ;;  %208 = vmatpush.msra.mxu2 %v1137_v25 }
  0x2a   :  { %128 = vmatpush.msra.mxu0 %v1145_v27  ;;  %228 = vmatpush.msra.mxu3 %v1141_v26 }
  0x2b   :  { %148 = vmatpush.msra.mxu1 %v1149_v28  ;;  %209 = vmatpush.msra.mxu2 %v1145_v27 }
  0x2c   :  { %129 = vmatpush.msra.mxu0 %v1153_v29  ;;  %229 = vmatpush.msra.mxu3 %v1149_v28 }
  0x2d   :  { %149 = vmatpush.msra.mxu1 %v1157_v30  ;;  %210 = vmatpush.msra.mxu2 %v1153_v29 }
  0x2e   :  { %130 = vmatpush.msra.mxu0 %v1161_v31  ;;  %230 = vmatpush.msra.mxu3 %v1157_v30 }
  0x2f   :  { %150 = vmatpush.msra.mxu1 %v1165_v32  ;;  %211 = vmatpush.msra.mxu2 %v1161_v31 }
  0x30   :  { %231 = vmatpush.msra.mxu3 %v1165_v32  ;;  %131 = vmatpush.msra.mxu0 %v1175_v33 }
  0x31   :  { %151 = vmatpush.msra.mxu1 %v1177_v34  ;;  %212 = vmatpush.msra.mxu2 %v1175_v33 }
  0x32   :  { %152 = vmatmul.f32.vlgmr.msra.gmra.mxu1 %v993_v35  ;;  %232 = vmatpush.msra.mxu3 %v1177_v34 }
  0x33   :  { %278 = vmatpush.msrb.mxu0 %v1054_v3  ;;  %298 = vmatpush.msrb.mxu1 %v1056_v4 }
  0x34   :  { %359 = vmatpush.msrb.mxu2 %v1054_v3  ;;  %379 = vmatpush.msrb.mxu3 %v1056_v4 }
  0x35   :  { %279 = vmatpush.msrb.mxu0 %v1060_v5  ;;  %299 = vmatpush.msrb.mxu1 %v1062_v6 }
  0x36   :  { %360 = vmatpush.msrb.mxu2 %v1060_v5  ;;  %380 = vmatpush.msrb.mxu3 %v1062_v6 }
  0x37   :  { %280 = vmatpush.msrb.mxu0 %v1065_v7  ;;  %300 = vmatpush.msrb.mxu1 %v1069_v8 }
  0x38   :  { %361 = vmatpush.msrb.mxu2 %v1065_v7  ;;  %381 = vmatpush.msrb.mxu3 %v1069_v8 }
  0x39   :  { %281 = vmatpush.msrb.mxu0 %v1073_v9  ;;  %301 = vmatpush.msrb.mxu1 %v1077_v10 }
  0x3a   :  { %362 = vmatpush.msrb.mxu2 %v1073_v9  ;;  %382 = vmatpush.msrb.mxu3 %v1077_v10 }
  0x3b   :  { %282 = vmatpush.msrb.mxu0 %v1081_v11  ;;  %302 = vmatpush.msrb.mxu1 %v1085_v12 }
  0x3c   :  { %363 = vmatpush.msrb.mxu2 %v1081_v11  ;;  %383 = vmatpush.msrb.mxu3 %v1085_v12 }
  0x3d   :  { %283 = vmatpush.msrb.mxu0 %v1089_v13  ;;  %303 = vmatpush.msrb.mxu1 %v1093_v14 }
  0x3e   :  { %364 = vmatpush.msrb.mxu2 %v1089_v13  ;;  %384 = vmatpush.msrb.mxu3 %v1093_v14 }
  0x3f   :  { %284 = vmatpush.msrb.mxu0 %v1097_v15  ;;  %304 = vmatpush.msrb.mxu1 %v1101_v16 }
  0x40   :  { %365 = vmatpush.msrb.mxu2 %v1097_v15  ;;  %385 = vmatpush.msrb.mxu3 %v1101_v16 }
  0x41   :  { %285 = vmatpush.msrb.mxu0 %v1105_v17  ;;  %305 = vmatpush.msrb.mxu1 %v1109_v18 }
  0x42   :  { %366 = vmatpush.msrb.mxu2 %v1105_v17  ;;  %386 = vmatpush.msrb.mxu3 %v1109_v18 }
  0x43   :  { %286 = vmatpush.msrb.mxu0 %v1113_v19  ;;  %306 = vmatpush.msrb.mxu1 %v1117_v20 }
  0x44   :  { %367 = vmatpush.msrb.mxu2 %v1113_v19  ;;  %387 = vmatpush.msrb.mxu3 %v1117_v20 }
  0x45   :  { %287 = vmatpush.msrb.mxu0 %v1121_v21  ;;  %307 = vmatpush.msrb.mxu1 %v1125_v22 }
  0x46   :  { %368 = vmatpush.msrb.mxu2 %v1121_v21  ;;  %388 = vmatpush.msrb.mxu3 %v1125_v22 }
  0x47   :  { %288 = vmatpush.msrb.mxu0 %v1129_v23  ;;  %308 = vmatpush.msrb.mxu1 %v1133_v24 }
  0x48   :  { %369 = vmatpush.msrb.mxu2 %v1129_v23  ;;  %389 = vmatpush.msrb.mxu3 %v1133_v24 }
  0x49   :  { %289 = vmatpush.msrb.mxu0 %v1137_v25  ;;  %309 = vmatpush.msrb.mxu1 %v1141_v26 }
  0x4a   :  { %370 = vmatpush.msrb.mxu2 %v1137_v25  ;;  %390 = vmatpush.msrb.mxu3 %v1141_v26 }
  0x4b   :  { %290 = vmatpush.msrb.mxu0 %v1145_v27  ;;  %310 = vmatpush.msrb.mxu1 %v1149_v28 }
  0x4c   :  { %371 = vmatpush.msrb.mxu2 %v1145_v27  ;;  %391 = vmatpush.msrb.mxu3 %v1149_v28 }
  0x4d   :  { %291 = vmatpush.msrb.mxu0 %v1153_v29  ;;  %311 = vmatpush.msrb.mxu1 %v1157_v30 }
  0x4e   :  { %372 = vmatpush.msrb.mxu2 %v1153_v29  ;;  %392 = vmatpush.msrb.mxu3 %v1157_v30 }
  0x4f   :  { %292 = vmatpush.msrb.mxu0 %v1161_v31  ;;  %312 = vmatpush.msrb.mxu1 %v1165_v32 }
  0x50   :  { %373 = vmatpush.msrb.mxu2 %v1161_v31  ;;  %393 = vmatpush.msrb.mxu3 %v1165_v32 }
  0x51   :  { %293 = vmatpush.msrb.mxu0 %v1175_v33  ;;  %313 = vmatpush.msrb.mxu1 %v1177_v34 }
  0x52   :  { %374 = vmatpush.msrb.mxu2 %v1175_v33  ;;  %394 = vmatpush.msrb.mxu3 %v1177_v34 }
  0x53   :  { %460 = vmatpush.msra.mxu1 %v1056_v4  ;;  %848 = vset.pattern.permute.xlu2 %v997_v56 }
  0x54   :  { %192 = vperm.xlu2 %848, %v1052_v2  }
  0x55   :  { %461 = vmatpush.msra.mxu1 %v1062_v6 }
  0x57   :  { %462 = vmatpush.msra.mxu1 %v1069_v8 }
  0x59   :  { %463 = vmatpush.msra.mxu1 %v1077_v10 }
  0x5b   :  { %464 = vmatpush.msra.mxu1 %v1085_v12 }
  0x5d   :  { %465 = vmatpush.msra.mxu1 %v1093_v14 }
  0x5f   :  { %466 = vmatpush.msra.mxu1 %v1101_v16 }
  0x61   :  { %467 = vmatpush.msra.mxu1 %v1109_v18 }
  0x63   :  { %468 = vmatpush.msra.mxu1 %v1117_v20 }
  0x65   :  { %469 = vmatpush.msra.mxu1 %v1125_v22 }
  0x67   :  { %470 = vmatpush.msra.mxu1 %v1133_v24 }
  0x69   :  { %471 = vmatpush.msra.mxu1 %v1141_v26 }
  0x6b   :  { %472 = vmatpush.msra.mxu1 %v1149_v28 }
  0x6d   :  { %473 = vmatpush.msra.mxu1 %v1157_v30 }
  0x6f   :  { %474 = vmatpush.msra.mxu1 %v1165_v32 }
  0x71   :  { %475 = vmatpush.msra.mxu1 %v1177_v34 }
  0x84   :  { %v112_v38 = vpop.permute.xlu0 %111 }
  0x85   :  { %vm113_vm0 = vcmp.eq.s32.totalorder %v112_v38, %v1234_v37 }
  0x86   :  { %798 = vmatmul.msk.f32.vlgmr.msra.gmra.mxu0 %vm113_vm0, %v994_v39 }
  0x87   :  { %440 = vmatpush.msra.mxu0 %v1054_v3 }
  0x89   :  { %441 = vmatpush.msra.mxu0 %v1060_v5 }
  0x8b   :  { %442 = vmatpush.msra.mxu0 %v1065_v7 }
  0x8d   :  { %443 = vmatpush.msra.mxu0 %v1073_v9 }
  0x8f   :  { %444 = vmatpush.msra.mxu0 %v1081_v11 }
  0x91   :  { %445 = vmatpush.msra.mxu0 %v1089_v13 }
  0x93   :  { %446 = vmatpush.msra.mxu0 %v1097_v15 }
  0x95   :  { %447 = vmatpush.msra.mxu0 %v1105_v17 }
  0x97   :  { %448 = vmatpush.msra.mxu0 %v1113_v19 }
  0x99   :  { %449 = vmatpush.msra.mxu0 %v1121_v21 }
  0x9b   :  { %450 = vmatpush.msra.mxu0 %v1129_v23 }
  0x9d   :  { %451 = vmatpush.msra.mxu0 %v1137_v25 }
  0x9f   :  { %452 = vmatpush.msra.mxu0 %v1145_v27 }
  0xa1   :  { %453 = vmatpush.msra.mxu0 %v1153_v29 }
  0xa3   :  { %454 = vmatpush.msra.mxu0 %v1161_v31 }
  0xa5   :  { %455 = vmatpush.msra.mxu0 %v1175_v33 }
  0xae   :  { %v193_v63 = vpop.permute.xlu2 %192 }
  0xaf   :  { %v153_v40 = vpop.f32.mrf.mxu1  ;;  %vm194_vm5 = vcmp.eq.s32.totalorder %v193_v63, %v1234_v37 }
  0xb0   :  { %v178_v58 = vadd.f32 %v1289_v57, %v153_v40  ;;  %801 = vmatmul.msk.f32.vlgmr.msra.gmra.mxu2 %vm194_vm5, %v994_v39 }
  0xb1   :  { %521 = vmatpush.msra.mxu2 %v1054_v3 }
  0xb3   :  { %522 = vmatpush.msra.mxu2 %v1060_v5 }
  0xb5   :  { %523 = vmatpush.msra.mxu2 %v1065_v7 }
  0xb7   :  { %524 = vmatpush.msra.mxu2 %v1073_v9 }
  0xb9   :  { %525 = vmatpush.msra.mxu2 %v1081_v11 }
  0xbb   :  { %526 = vmatpush.msra.mxu2 %v1089_v13 }
  0xbd   :  { %527 = vmatpush.msra.mxu2 %v1097_v15 }
  0xbf   :  { %528 = vmatpush.msra.mxu2 %v1105_v17 }
  0xc1   :  { %529 = vmatpush.msra.mxu2 %v1113_v19 }
  0xc3   :  { %530 = vmatpush.msra.mxu2 %v1121_v21 }
  0xc5   :  { %531 = vmatpush.msra.mxu2 %v1129_v23 }
  0xc7   :  { %532 = vmatpush.msra.mxu2 %v1137_v25 }
  0xc9   :  { %533 = vmatpush.msra.mxu2 %v1145_v27 }
  0xcb   :  { %534 = vmatpush.msra.mxu2 %v1153_v29 }
  0xcd   :  { %535 = vmatpush.msra.mxu2 %v1161_v31 }
  0xcf   :  { %536 = vmatpush.msra.mxu2 %v1175_v33 }
 0x103   :  { %v133_v41 = vpop.f32.mrf.mxu0 }
 0x104   :  { %v156_v42 = vadd.f32 %v153_v40, %v133_v41 }
 0x106   :  { %v799_v43 = vmul.f32 -1.442695, %v156_v42 }
 0x108   :  { %858 = vpow2.f32 %v799_v43 }
 0x10e   :  { %v859_v44 = vpop.eup %858 }
 0x10f   :  { %v160_v45 = vadd.f32 1.0, %v859_v44 }
 0x111   :  { %860 = vrcp.f32 %v160_v45  ;;  %v172_v49 = vand.u32 2147483648, %v160_v45  ;;  %v170_v51 = vand.u32 2147483647, %v160_v45  ;;  %vm166_vm2 = vweird.f32 %v160_v45 }
 0x113   :  { %v173_v53 = vor.u32 1.1754944e-38, %v172_v49  ;;  %vm171_vm4 = vcmp.eq.f32.partialorder %v170_v51, 8.507059e+37 }
 0x117   :  { %v861_v46 = vpop.eup %860 }
 0x118   :  { %v162_v47 = vmul.f32 %v861_v46, %v160_v45  ;;  %vm167_vm1 = vweird.f32 %v861_v46 }
 0x119   :  { %vm168_vm3 = vmor %vm166_vm2, %vm167_vm1 }
 0x11a   :  { %v163_v48 = vsub.f32 1.0, %v162_v47 }
 0x11c   :  { %v164_v50 = vmul.f32 %v861_v46, %v163_v48 }
 0x11e   :  { %v165_v52 = vadd.f32 %v861_v46, %v164_v50 }
 0x120   :  { %v169_v54 = vsel %vm168_vm3, %v861_v46, %v165_v52 }
 0x121   :  { %v174_v55 = vsel %vm171_vm4, %v173_v53, %v169_v54 }
 0x122   :  { %182 = vrot.lane.b32.xlu1 %v174_v55, %s995_s0  ;;  %176 = vrot.lane.b32.xlu0 %v174_v55, %s996_s2 }
 0x194   :  { %v177_v59 = vpop.permute.xlu0 %176  ;;  %v183_v0 = vpop.permute.xlu1 %182 }
 0x195   :  { %v179_v60 = vmul.f32 %v178_v58, %v177_v59  ;;  %v186_v1 = vsub.f32 1.0, %v183_v0  ;;  %v188_v36 = vmul.f32 0.0, %v183_v0  ;;  %v999_v58 = vmov 2  }
 0x196   :  { %849 = vset.pattern.permute.xlu2 %v999_v58 }
 0x197   :  { %v180_v61 = vadd.f32 %v179_v60, %v133_v41  ;;  %v214_v41 = vpop.f32.mrf.mxu2 }
 0x199   :  { %862 = vtanh.f32 %v180_v61 }
 0x19f   :  { %v863_v62 = vpop.eup %862 }
 0x1a0   :  { %184 = vrot.lane.b32.xlu1 %v863_v62, %s998_s16 }
 0x212   :  { %v185_v35 = vpop.permute.xlu1 %184 }
 0x213   :  { %v187_v38 = vmul.f32 %v186_v1, %v185_v35 }
 0x215   :  { %v1311_v40 = vadd.f32 %v188_v36, %v187_v38 }
 0x217   :  { %802 = vmatmul.msk.f32.vlgmr.msra.gmra.mxu3 %vm109_vm6, %v1311_v40  ;;  %v190_v36 = vsel %vm109_vm6, %v1311_v40, 0.0 }
 0x218   :  { %541 = vmatpush.msra.mxu3 %v1056_v4 }
 0x21a   :  { %542 = vmatpush.msra.mxu3 %v1062_v6 }
 0x21c   :  { %543 = vmatpush.msra.mxu3 %v1069_v8 }
 0x21e   :  { %544 = vmatpush.msra.mxu3 %v1077_v10 }
 0x220   :  { %545 = vmatpush.msra.mxu3 %v1085_v12 }
 0x222   :  { %546 = vmatpush.msra.mxu3 %v1093_v14 }
 0x224   :  { %547 = vmatpush.msra.mxu3 %v1101_v16 }
 0x226   :  { %548 = vmatpush.msra.mxu3 %v1109_v18 }
 0x228   :  { %549 = vmatpush.msra.mxu3 %v1117_v20 }
 0x22a   :  { %550 = vmatpush.msra.mxu3 %v1125_v22 }
 0x22c   :  { %551 = vmatpush.msra.mxu3 %v1133_v24 }
 0x22e   :  { %552 = vmatpush.msra.mxu3 %v1141_v26 }
 0x230   :  { %553 = vmatpush.msra.mxu3 %v1149_v28 }
 0x232   :  { %554 = vmatpush.msra.mxu3 %v1157_v30 }
 0x234   :  { %555 = vmatpush.msra.mxu3 %v1165_v32 }
 0x236   :  { %556 = vmatpush.msra.mxu3 %v1177_v34 }
 0x29a   :  { %v234_v42 = vpop.f32.mrf.mxu3 }
 0x29b   :  { %v237_v43 = vadd.f32 %v234_v42, %v214_v41  ;;  %v259_v59 = vadd.f32 %v1289_v57, %v234_v42 }
 0x29d   :  { %v803_v44 = vmul.f32 -1.442695, %v237_v43 }
 0x29f   :  { %864 = vpow2.f32 %v803_v44 }
 0x2a5   :  { %v865_v45 = vpop.eup %864 }
 0x2a6   :  { %v241_v46 = vadd.f32 1.0, %v865_v45  ;;  %v1000_v45 = vmov 3  }
 0x2a7   :  { %850 = vset.pattern.permute.xlu0 %v1000_v45  ;;  %v1002_v45 = vmov 5  }
 0x2a8   :  { %866 = vrcp.f32 %v241_v46  ;;  %v253_v50 = vand.u32 2147483648, %v241_v46  ;;  %v251_v52 = vand.u32 2147483647, %v241_v46  ;;  %vm247_vm8 = vweird.f32 %v241_v46 }
 0x2aa   :  { %v254_v54 = vor.u32 1.1754944e-38, %v253_v50  ;;  %vm252_vm10 = vcmp.eq.f32.partialorder %v251_v52, 8.507059e+37 }
 0x2ae   :  { %v867_v47 = vpop.eup %866 }
 0x2af   :  { %v243_v48 = vmul.f32 %v867_v47, %v241_v46  ;;  %vm248_vm7 = vweird.f32 %v867_v47 }
 0x2b0   :  { %vm249_vm9 = vmor %vm247_vm8, %vm248_vm7 }
 0x2b1   :  { %v244_v49 = vsub.f32 1.0, %v243_v48 }
 0x2b3   :  { %v245_v51 = vmul.f32 %v867_v47, %v244_v49 }
 0x2b5   :  { %v246_v53 = vadd.f32 %v867_v47, %v245_v51 }
 0x2b7   :  { %v250_v55 = vsel %vm249_vm9, %v867_v47, %v246_v53 }
 0x2b8   :  { %v255_v56 = vsel %vm252_vm10, %v254_v54, %v250_v55 }
 0x2b9   :  { %263 = vrot.lane.b32.xlu0 %v255_v56, %s995_s0  ;;  %257 = vrot.lane.b32.xlu2 %v255_v56, %s996_s2 }
 0x2c1   :  { %273 = vperm.xlu2 %849, %v1052_v2  }
 0x313   :  { %v258_v60 = vpop.permute.xlu2 %257 }
 0x314   :  { %v260_v61 = vmul.f32 %v259_v59, %v258_v60 }
 0x316   :  { %v261_v62 = vadd.f32 %v260_v61, %v214_v41 }
 0x318   :  { %868 = vtanh.f32 %v261_v62 }
 0x31b   :  { %v274_v0 = vpop.permute.xlu2 %273 }
 0x31c   :  { %vm275_vm11 = vcmp.eq.s32.totalorder %v274_v0, %v1234_v37 }
 0x31d   :  { %805 = vmatmul.msk.f32.vlgmr.msrb.gmra.mxu0 %vm275_vm11, %v994_v39 }
 0x31e   :  { %v869_v63 = vpop.eup %868  ;;  %602 = vmatpush.msrb.mxu0 %v1054_v3 }
 0x31f   :  { %265 = vrot.lane.b32.xlu1 %v869_v63, %s998_s16 }
 0x320   :  { %603 = vmatpush.msrb.mxu0 %v1060_v5 }
 0x322   :  { %604 = vmatpush.msrb.mxu0 %v1065_v7 }
 0x324   :  { %605 = vmatpush.msrb.mxu0 %v1073_v9 }
 0x326   :  { %606 = vmatpush.msrb.mxu0 %v1081_v11 }
 0x328   :  { %607 = vmatpush.msrb.mxu0 %v1089_v13 }
 0x32a   :  { %608 = vmatpush.msrb.mxu0 %v1097_v15 }
 0x32b   :  { %v264_v1 = vpop.permute.xlu0 %263 }
 0x32c   :  { %609 = vmatpush.msrb.mxu0 %v1105_v17  ;;  %v267_v35 = vsub.f32 1.0, %v264_v1  ;;  %v269_v41 = vmul.f32 %v264_v1, %v190_v36 }
 0x32e   :  { %610 = vmatpush.msrb.mxu0 %v1113_v19 }
 0x330   :  { %611 = vmatpush.msrb.mxu0 %v1121_v21 }
 0x332   :  { %612 = vmatpush.msrb.mxu0 %v1129_v23 }
 0x334   :  { %613 = vmatpush.msrb.mxu0 %v1137_v25 }
 0x336   :  { %614 = vmatpush.msrb.mxu0 %v1145_v27 }
 0x338   :  { %615 = vmatpush.msrb.mxu0 %v1153_v29 }
 0x33a   :  { %616 = vmatpush.msrb.mxu0 %v1161_v31 }
 0x33c   :  { %617 = vmatpush.msrb.mxu0 %v1175_v33 }
 0x391   :  { %v266_v38 = vpop.permute.xlu1 %265 }
 0x392   :  { %v268_v42 = vmul.f32 %v267_v35, %v266_v38 }
 0x394   :  { %v1358_v43 = vadd.f32 %v269_v41, %v268_v42 }
 0x396   :  { %806 = vmatmul.msk.f32.vlgmr.msrb.gmra.mxu1 %vm109_vm6, %v1358_v43 }
 0x397   :  { %622 = vmatpush.msrb.mxu1 %v1056_v4 }
 0x399   :  { %623 = vmatpush.msrb.mxu1 %v1062_v6 }
 0x39a   :  { %v295_v40 = vpop.f32.mrf.mxu0 }
 0x39b   :  { %624 = vmatpush.msrb.mxu1 %v1069_v8 }
 0x39d   :  { %625 = vmatpush.msrb.mxu1 %v1077_v10 }
 0x39f   :  { %626 = vmatpush.msrb.mxu1 %v1085_v12 }
 0x3a1   :  { %627 = vmatpush.msrb.mxu1 %v1093_v14 }
 0x3a3   :  { %628 = vmatpush.msrb.mxu1 %v1101_v16 }
 0x3a5   :  { %629 = vmatpush.msrb.mxu1 %v1109_v18 }
 0x3a7   :  { %630 = vmatpush.msrb.mxu1 %v1117_v20 }
 0x3a9   :  { %631 = vmatpush.msrb.mxu1 %v1125_v22 }
 0x3ab   :  { %632 = vmatpush.msrb.mxu1 %v1133_v24 }
 0x3ad   :  { %633 = vmatpush.msrb.mxu1 %v1141_v26 }
 0x3af   :  { %634 = vmatpush.msrb.mxu1 %v1149_v28 }
 0x3b1   :  { %635 = vmatpush.msrb.mxu1 %v1157_v30 }
 0x3b3   :  { %636 = vmatpush.msrb.mxu1 %v1165_v32 }
 0x3b5   :  { %637 = vmatpush.msrb.mxu1 %v1177_v34 }
 0x413   :  { %v315_v44 = vpop.f32.mrf.mxu1 }
 0x414   :  { %v318_v46 = vadd.f32 %v315_v44, %v295_v40  ;;  %v340_v61 = vadd.f32 %v1289_v57, %v315_v44 }
 0x416   :  { %v807_v47 = vmul.f32 -1.442695, %v318_v46 }
 0x418   :  { %870 = vpow2.f32 %v807_v47 }
 0x41e   :  { %v871_v48 = vpop.eup %870 }
 0x41f   :  { %v322_v49 = vadd.f32 1.0, %v871_v48 }
 0x421   :  { %872 = vrcp.f32 %v322_v49  ;;  %v334_v53 = vand.u32 2147483648, %v322_v49  ;;  %v332_v55 = vand.u32 2147483647, %v322_v49  ;;  %vm328_vm13 = vweird.f32 %v322_v49 }
 0x423   :  { %v335_v58 = vor.u32 1.1754944e-38, %v334_v53  ;;  %vm333_vm15 = vcmp.eq.f32.partialorder %v332_v55, 8.507059e+37 }
 0x427   :  { %v873_v50 = vpop.eup %872 }
 0x428   :  { %v324_v51 = vmul.f32 %v873_v50, %v322_v49  ;;  %vm329_vm12 = vweird.f32 %v873_v50 }
 0x429   :  { %vm330_vm14 = vmor %vm328_vm13, %vm329_vm12 }
 0x42a   :  { %v325_v52 = vsub.f32 1.0, %v324_v51 }
 0x42c   :  { %v326_v54 = vmul.f32 %v873_v50, %v325_v52 }
 0x42e   :  { %v327_v56 = vadd.f32 %v873_v50, %v326_v54 }
 0x430   :  { %v331_v59 = vsel %vm330_vm14, %v873_v50, %v327_v56 }
 0x431   :  { %v336_v60 = vsel %vm333_vm15, %v335_v58, %v331_v59 }
 0x432   :  { %344 = vrot.lane.b32.xlu1 %v336_v60, %s995_s0  ;;  %338 = vrot.lane.b32.xlu0 %v336_v60, %s996_s2 }
 0x43a   :  { %354 = vperm.xlu0 %850, %v1052_v2  }
 0x442   :  { %852 = vset.pattern.permute.xlu0 %v1002_v45  ;;  %v1004_v45 = vmov 7  }
 0x4a4   :  { %v339_v62 = vpop.permute.xlu0 %338 }
 0x4a5   :  { %v341_v63 = vmul.f32 %v340_v61, %v339_v62 }
 0x4a7   :  { %v342_v0 = vadd.f32 %v341_v63, %v295_v40 }
 0x4a9   :  { %874 = vtanh.f32 %v342_v0 }
 0x4ac   :  { %v355_v35 = vpop.permute.xlu0 %354 }
 0x4ad   :  { %vm356_vm0 = vcmp.eq.s32.totalorder %v355_v35, %v1234_v37 }
 0x4ae   :  { %809 = vmatmul.msk.f32.vlgmr.msrb.gmra.mxu2 %vm356_vm0, %v994_v39 }
 0x4af   :  { %v875_v1 = vpop.eup %874  ;;  %683 = vmatpush.msrb.mxu2 %v1054_v3  ;;  %v345_v3 = vpop.permute.xlu1 %344 }
 0x4b0   :  { %346 = vrot.lane.b32.xlu2 %v875_v1, %s998_s16 }
 0x4b1   :  { %684 = vmatpush.msrb.mxu2 %v1060_v5  ;;  %v348_v5 = vsub.f32 1.0, %v345_v3 }
 0x4b3   :  { %685 = vmatpush.msrb.mxu2 %v1065_v7  ;;  %v271_v7 = vsel %vm109_vm6, %v1358_v43, 0.0 }
 0x4b5   :  { %686 = vmatpush.msrb.mxu2 %v1073_v9 }
 0x4b7   :  { %687 = vmatpush.msrb.mxu2 %v1081_v11  ;;  %v350_v11 = vmul.f32 %v345_v3, %v271_v7 }
 0x4b9   :  { %688 = vmatpush.msrb.mxu2 %v1089_v13 }
 0x4bb   :  { %689 = vmatpush.msrb.mxu2 %v1097_v15 }
 0x4bd   :  { %690 = vmatpush.msrb.mxu2 %v1105_v17 }
 0x4bf   :  { %691 = vmatpush.msrb.mxu2 %v1113_v19 }
 0x4c1   :  { %692 = vmatpush.msrb.mxu2 %v1121_v21 }
 0x4c3   :  { %693 = vmatpush.msrb.mxu2 %v1129_v23 }
 0x4c5   :  { %694 = vmatpush.msrb.mxu2 %v1137_v25 }
 0x4c7   :  { %695 = vmatpush.msrb.mxu2 %v1145_v27 }
 0x4c9   :  { %696 = vmatpush.msrb.mxu2 %v1153_v29 }
 0x4cb   :  { %697 = vmatpush.msrb.mxu2 %v1161_v31 }
 0x4cd   :  { %698 = vmatpush.msrb.mxu2 %v1175_v33 }
 0x50a   :  { %v347_v9 = vpop.permute.xlu2 %346 }
 0x50b   :  { %v349_v13 = vmul.f32 %v348_v5, %v347_v9 }
 0x50d   :  { %v351_v15 = vadd.f32 %v350_v11, %v349_v13 }
 0x50f   :  { %810 = vmatmul.msk.f32.vlgmr.msrb.gmra.mxu3 %vm109_vm6, %v351_v15  ;;  %v352_v36 = vsel %vm109_vm6, %v351_v15, 0.0 }
 0x510   :  { %703 = vmatpush.msrb.mxu3 %v1056_v4 }
 0x512   :  { %704 = vmatpush.msrb.mxu3 %v1062_v6 }
 0x514   :  { %705 = vmatpush.msrb.mxu3 %v1069_v8 }
 0x516   :  { %706 = vmatpush.msrb.mxu3 %v1077_v10 }
 0x518   :  { %707 = vmatpush.msrb.mxu3 %v1085_v12 }
 0x51a   :  { %708 = vmatpush.msrb.mxu3 %v1093_v14 }
 0x51c   :  { %709 = vmatpush.msrb.mxu3 %v1101_v16 }
 0x51e   :  { %710 = vmatpush.msrb.mxu3 %v1109_v18 }
 0x520   :  { %711 = vmatpush.msrb.mxu3 %v1117_v20 }
 0x522   :  { %712 = vmatpush.msrb.mxu3 %v1125_v22 }
 0x524   :  { %713 = vmatpush.msrb.mxu3 %v1133_v24 }
 0x526   :  { %714 = vmatpush.msrb.mxu3 %v1141_v26  ;;  %v1001_v26 = vmov 4  }
 0x527   :  { %851 = vset.pattern.permute.xlu2 %v1001_v26  ;;  %v910_v26 = vld [vmem:[#allocation3] sm:$0xff] }
 0x528   :  { %715 = vmatpush.msrb.mxu3 %v1149_v28 }
 0x52a   :  { %716 = vmatpush.msrb.mxu3 %v1157_v30 }
 0x52c   :  { %717 = vmatpush.msrb.mxu3 %v1165_v32 }
 0x52e   :  { %718 = vmatpush.msrb.mxu3 %v1177_v34 }
 0x531   :  { %v376_v4 = vpop.f32.mrf.mxu2 }
 0x592   :  { %v396_v6 = vpop.f32.mrf.mxu3 }
 0x593   :  { %v399_v8 = vadd.f32 %v396_v6, %v376_v4  ;;  %v421_v27 = vadd.f32 %v1289_v57, %v396_v6 }
 0x595   :  { %v811_v10 = vmul.f32 -1.442695, %v399_v8 }
 0x597   :  { %876 = vpow2.f32 %v811_v10 }
 0x59d   :  { %v877_v12 = vpop.eup %876 }
 0x59e   :  { %v403_v14 = vadd.f32 1.0, %v877_v12 }
 0x5a0   :  { %878 = vrcp.f32 %v403_v14  ;;  %v415_v19 = vand.u32 2147483648, %v403_v14  ;;  %v413_v21 = vand.u32 2147483647, %v403_v14  ;;  %vm409_vm2 = vweird.f32 %v403_v14 }
 0x5a2   :  { %v416_v23 = vor.u32 1.1754944e-38, %v415_v19  ;;  %vm414_vm4 = vcmp.eq.f32.partialorder %v413_v21, 8.507059e+37 }
 0x5a6   :  { %v879_v16 = vpop.eup %878 }
 0x5a7   :  { %v405_v17 = vmul.f32 %v879_v16, %v403_v14  ;;  %vm410_vm1 = vweird.f32 %v879_v16 }
 0x5a8   :  { %vm411_vm3 = vmor %vm409_vm2, %vm410_vm1 }
 0x5a9   :  { %v406_v18 = vsub.f32 1.0, %v405_v17 }
 0x5ab   :  { %v407_v20 = vmul.f32 %v879_v16, %v406_v18 }
 0x5ad   :  { %v408_v22 = vadd.f32 %v879_v16, %v407_v20 }
 0x5af   :  { %v412_v24 = vsel %vm411_vm3, %v879_v16, %v408_v22 }
 0x5b0   :  { %v417_v25 = vsel %vm414_vm4, %v416_v23, %v412_v24 }
 0x5b1   :  { %425 = vrot.lane.b32.xlu2 %v417_v25, %s995_s0  ;;  %419 = vrot.lane.b32.xlu1 %v417_v25, %s996_s2  ;;  %v1003_v25 = vmov 6  }
 0x5b9   :  { %435 = vperm.xlu2 %851, %v1052_v2  }
 0x5c1   :  { %853 = vset.pattern.permute.xlu2 %v1003_v25 }
 0x60b   :  { %v426_v32 = vpop.permute.xlu2 %425 }
 0x60c   :  { %v429_v34 = vsub.f32 1.0, %v426_v32  ;;  %v431_v41 = vmul.f32 %v426_v32, %v352_v36 }
 0x613   :  { %v436_v33 = vpop.permute.xlu2 %435 }
 0x614   :  { %vm437_vm5 = vcmp.eq.s32.totalorder %v436_v33, %v1234_v37 }
 0x615   :  { %813 = vmatmul.msk.f32.vlgmr.msra.gmra.mxu0 %vm437_vm5, %v994_v39 }
 0x623   :  { %v420_v28 = vpop.permute.xlu1 %419 }
 0x624   :  { %v422_v29 = vmul.f32 %v421_v27, %v420_v28 }
 0x626   :  { %v423_v30 = vadd.f32 %v422_v29, %v376_v4 }
 0x628   :  { %880 = vtanh.f32 %v423_v30 }
 0x62e   :  { %v881_v31 = vpop.eup %880 }
 0x62f   :  { %427 = vrot.lane.b32.xlu1 %v881_v31, %s998_s16 }
 0x692   :  { %v457_v40 = vpop.f32.mrf.mxu0 }
 0x6a1   :  { %v428_v38 = vpop.permute.xlu1 %427 }
 0x6a2   :  { %v430_v42 = vmul.f32 %v429_v34, %v428_v38 }
 0x6a4   :  { %v432_v43 = vadd.f32 %v431_v41, %v430_v42 }
 0x6a6   :  { %814 = vmatmul.msk.f32.vlgmr.msra.gmra.mxu1 %vm109_vm6, %v432_v43  ;;  %v433_v7 = vsel %vm109_vm6, %v432_v43, 0.0 }
 0x723   :  { %v477_v44 = vpop.f32.mrf.mxu1 }
 0x724   :  { %v480_v46 = vadd.f32 %v477_v44, %v457_v40  ;;  %v502_v61 = vadd.f32 %v1289_v57, %v477_v44 }
 0x726   :  { %v815_v47 = vmul.f32 -1.442695, %v480_v46 }
 0x728   :  { %882 = vpow2.f32 %v815_v47 }
 0x72e   :  { %v883_v48 = vpop.eup %882 }
 0x72f   :  { %v484_v49 = vadd.f32 1.0, %v883_v48 }
 0x731   :  { %884 = vrcp.f32 %v484_v49  ;;  %v496_v53 = vand.u32 2147483648, %v484_v49  ;;  %v494_v55 = vand.u32 2147483647, %v484_v49  ;;  %vm490_vm8 = vweird.f32 %v484_v49 }
 0x733   :  { %v497_v58 = vor.u32 1.1754944e-38, %v496_v53  ;;  %vm495_vm10 = vcmp.eq.f32.partialorder %v494_v55, 8.507059e+37 }
 0x737   :  { %v885_v50 = vpop.eup %884 }
 0x738   :  { %v486_v51 = vmul.f32 %v885_v50, %v484_v49  ;;  %vm491_vm7 = vweird.f32 %v885_v50 }
 0x739   :  { %vm492_vm9 = vmor %vm490_vm8, %vm491_vm7 }
 0x73a   :  { %v487_v52 = vsub.f32 1.0, %v486_v51 }
 0x73c   :  { %v488_v54 = vmul.f32 %v885_v50, %v487_v52 }
 0x73e   :  { %v489_v56 = vadd.f32 %v885_v50, %v488_v54 }
 0x740   :  { %v493_v59 = vsel %vm492_vm9, %v885_v50, %v489_v56 }
 0x741   :  { %v498_v60 = vsel %vm495_vm10, %v497_v58, %v493_v59 }
 0x742   :  { %506 = vrot.lane.b32.xlu1 %v498_v60, %s995_s0  ;;  %500 = vrot.lane.b32.xlu0 %v498_v60, %s996_s2 }
 0x74a   :  { %516 = vperm.xlu0 %852, %v1052_v2  }
 0x752   :  { %854 = vset.pattern.permute.xlu0 %v1004_v45 }
 0x7b4   :  { %v501_v62 = vpop.permute.xlu0 %500  ;;  %v507_v3 = vpop.permute.xlu1 %506 }
 0x7b5   :  { %v503_v63 = vmul.f32 %v502_v61, %v501_v62  ;;  %v510_v5 = vsub.f32 1.0, %v507_v3  ;;  %v512_v9 = vmul.f32 %v507_v3, %v433_v7 }
 0x7b7   :  { %v504_v0 = vadd.f32 %v503_v63, %v457_v40 }
 0x7b9   :  { %886 = vtanh.f32 %v504_v0 }
 0x7bc   :  { %v517_v35 = vpop.permute.xlu0 %516 }
 0x7bd   :  { %vm518_vm11 = vcmp.eq.s32.totalorder %v517_v35, %v1234_v37 }
 0x7be   :  { %817 = vmatmul.msk.f32.vlgmr.msra.gmra.mxu2 %vm518_vm11, %v994_v39 }
 0x7bf   :  { %v887_v1 = vpop.eup %886 }
 0x7c0   :  { %508 = vrot.lane.b32.xlu2 %v887_v1, %s998_s16 }
 0x81a   :  { %v509_v2 = vpop.permute.xlu2 %508 }
 0x81b   :  { %v511_v11 = vmul.f32 %v510_v5, %v509_v2 }
 0x81d   :  { %v513_v13 = vadd.f32 %v512_v9, %v511_v11 }
 0x81f   :  { %818 = vmatmul.msk.f32.vlgmr.msra.gmra.mxu3 %vm109_vm6, %v513_v13  ;;  %v514_v36 = vsel %vm109_vm6, %v513_v13, 0.0 }
 0x841   :  { %v538_v15 = vpop.f32.mrf.mxu2 }
 0x8a2   :  { %v558_v4 = vpop.f32.mrf.mxu3 }
 0x8a3   :  { %v561_v6 = vadd.f32 %v558_v4, %v538_v15  ;;  %v583_v27 = vadd.f32 %v1289_v57, %v558_v4 }
 0x8a5   :  { %v819_v8 = vmul.f32 -1.442695, %v561_v6 }
 0x8a7   :  { %888 = vpow2.f32 %v819_v8 }
 0x8ad   :  { %v889_v10 = vpop.eup %888 }
 0x8ae   :  { %v565_v12 = vadd.f32 1.0, %v889_v10 }
 0x8b0   :  { %890 = vrcp.f32 %v565_v12  ;;  %v577_v18 = vand.u32 2147483648, %v565_v12  ;;  %v575_v20 = vand.u32 2147483647, %v565_v12  ;;  %vm571_vm13 = vweird.f32 %v565_v12 }
 0x8b2   :  { %v578_v22 = vor.u32 1.1754944e-38, %v577_v18  ;;  %vm576_vm15 = vcmp.eq.f32.partialorder %v575_v20, 8.507059e+37 }
 0x8b6   :  { %v891_v14 = vpop.eup %890 }
 0x8b7   :  { %v567_v16 = vmul.f32 %v891_v14, %v565_v12  ;;  %vm572_vm12 = vweird.f32 %v891_v14 }
 0x8b8   :  { %vm573_vm14 = vmor %vm571_vm13, %vm572_vm12 }
 0x8b9   :  { %v568_v17 = vsub.f32 1.0, %v567_v16 }
 0x8bb   :  { %v569_v19 = vmul.f32 %v891_v14, %v568_v17 }
 0x8bd   :  { %v570_v21 = vadd.f32 %v891_v14, %v569_v19 }
 0x8bf   :  { %v574_v23 = vsel %vm573_vm14, %v891_v14, %v570_v21 }
 0x8c0   :  { %v579_v24 = vsel %vm576_vm15, %v578_v22, %v574_v23 }
 0x8c1   :  { %587 = vrot.lane.b32.xlu2 %v579_v24, %s995_s0  ;;  %581 = vrot.lane.b32.xlu1 %v579_v24, %s996_s2 }
 0x8c9   :  { %597 = vperm.xlu2 %853, %v910_v26  }
 0x91b   :  { %v588_v32 = vpop.permute.xlu2 %587 }
 0x91c   :  { %v591_v34 = vsub.f32 1.0, %v588_v32  ;;  %v593_v41 = vmul.f32 %v588_v32, %v514_v36  ;;  %v856_v36 = vld [vmem:[%s1484_s4] ss:$0 sm:$0xff] }
 0x923   :  { %v598_v33 = vpop.permute.xlu2 %597 }
 0x924   :  { %vm599_vm0 = vcmp.eq.s32.totalorder %v598_v33, %v1234_v37 }
 0x925   :  { %821 = vmatmul.msk.f32.vlgmr.msrb.gmra.mxu0 %vm599_vm0, %v994_v39 }
 0x933   :  { %v582_v28 = vpop.permute.xlu1 %581 }
 0x934   :  { %v584_v29 = vmul.f32 %v583_v27, %v582_v28 }
 0x936   :  { %v585_v30 = vadd.f32 %v584_v29, %v538_v15 }
 0x938   :  { %892 = vtanh.f32 %v585_v30 }
 0x93e   :  { %v893_v31 = vpop.eup %892 }
 0x93f   :  { %589 = vrot.lane.b32.xlu1 %v893_v31, %s998_s16 }
 0x9a2   :  { %v619_v40 = vpop.f32.mrf.mxu0 }
 0x9b1   :  { %v590_v38 = vpop.permute.xlu1 %589 }
 0x9b2   :  { %v592_v42 = vmul.f32 %v591_v34, %v590_v38 }
 0x9b4   :  { %v594_v43 = vadd.f32 %v593_v41, %v592_v42  ;;  %v857_v42 = vld [vmem:[#allocation2] ss:$0 sm:$0xff] }
 0x9b6   :  { %822 = vmatmul.msk.f32.vlgmr.msrb.gmra.mxu1 %vm109_vm6, %v594_v43  ;;  %v595_v7 = vsel %vm109_vm6, %v594_v43, 0.0 }
 0xa33   :  { %v639_v44 = vpop.f32.mrf.mxu1 }
 0xa34   :  { %v642_v46 = vadd.f32 %v639_v44, %v619_v40  ;;  %v664_v61 = vadd.f32 %v1289_v57, %v639_v44 }
 0xa36   :  { %v823_v47 = vmul.f32 -1.442695, %v642_v46 }
 0xa38   :  { %894 = vpow2.f32 %v823_v47 }
 0xa3e   :  { %v895_v48 = vpop.eup %894 }
 0xa3f   :  { %v646_v49 = vadd.f32 1.0, %v895_v48 }
 0xa41   :  { %896 = vrcp.f32 %v646_v49  ;;  %v658_v53 = vand.u32 2147483648, %v646_v49  ;;  %v656_v55 = vand.u32 2147483647, %v646_v49  ;;  %vm652_vm2 = vweird.f32 %v646_v49 }
 0xa43   :  { %v659_v58 = vor.u32 1.1754944e-38, %v658_v53  ;;  %vm657_vm4 = vcmp.eq.f32.partialorder %v656_v55, 8.507059e+37 }
 0xa47   :  { %v897_v50 = vpop.eup %896 }
 0xa48   :  { %v648_v51 = vmul.f32 %v897_v50, %v646_v49  ;;  %vm653_vm1 = vweird.f32 %v897_v50 }
 0xa49   :  { %vm654_vm3 = vmor %vm652_vm2, %vm653_vm1 }
 0xa4a   :  { %v649_v52 = vsub.f32 1.0, %v648_v51 }
 0xa4c   :  { %v650_v54 = vmul.f32 %v897_v50, %v649_v52 }
 0xa4e   :  { %v651_v56 = vadd.f32 %v897_v50, %v650_v54 }
 0xa50   :  { %v655_v59 = vsel %vm654_vm3, %v897_v50, %v651_v56 }
 0xa51   :  { %v660_v60 = vsel %vm657_vm4, %v659_v58, %v655_v59 }
 0xa52   :  { %668 = vrot.lane.b32.xlu1 %v660_v60, %s995_s0  ;;  %662 = vrot.lane.b32.xlu0 %v660_v60, %s996_s2 }
 0xa5a   :  { %678 = vperm.xlu0 %854, %v910_v26  }
 0xac4   :  { %v663_v62 = vpop.permute.xlu0 %662  ;;  %v669_v3 = vpop.permute.xlu1 %668 }
 0xac5   :  { %v665_v63 = vmul.f32 %v664_v61, %v663_v62  ;;  %v672_v5 = vsub.f32 1.0, %v669_v3  ;;  %v674_v9 = vmul.f32 %v669_v3, %v595_v7 }
 0xac7   :  { %v666_v0 = vadd.f32 %v665_v63, %v619_v40 }
 0xac9   :  { %898 = vtanh.f32 %v666_v0 }
 0xacc   :  { %v679_v35 = vpop.permute.xlu0 %678 }
 0xacd   :  { %vm680_vm5 = vcmp.eq.s32.totalorder %v679_v35, %v1234_v37 }
 0xace   :  { %825 = vmatmul.msk.f32.vlgmr.msrb.gmra.mxu2 %vm680_vm5, %v994_v39 }
 0xacf   :  { %v899_v1 = vpop.eup %898 }
 0xad0   :  { %670 = vrot.lane.b32.xlu2 %v899_v1, %s998_s16 }
 0xb2a   :  { %v671_v2 = vpop.permute.xlu2 %670 }
 0xb2b   :  { %v673_v11 = vmul.f32 %v672_v5, %v671_v2 }
 0xb2d   :  { %v675_v13 = vadd.f32 %v674_v9, %v673_v11 }
 0xb2f   :  { %826 = vmatmul.msk.f32.vlgmr.msrb.gmra.mxu3 %vm109_vm6, %v675_v13  ;;  %v676_v31 = vsel %vm109_vm6, %v675_v13, 0.0 }
 0xb51   :  { %v700_v15 = vpop.f32.mrf.mxu2 }
 0xbb2   :  { %v720_v4 = vpop.f32.mrf.mxu3 }
 0xbb3   :  { %v723_v6 = vadd.f32 %v720_v4, %v700_v15  ;;  %v745_v24 = vadd.f32 %v1289_v57, %v720_v4 }
 0xbb5   :  { %v827_v8 = vmul.f32 -1.442695, %v723_v6 }
 0xbb7   :  { %900 = vpow2.f32 %v827_v8 }
 0xbbd   :  { %v901_v10 = vpop.eup %900 }
 0xbbe   :  { %v727_v12 = vadd.f32 1.0, %v901_v10 }
 0xbc0   :  { %902 = vrcp.f32 %v727_v12  ;;  %v739_v17 = vand.u32 2147483648, %v727_v12  ;;  %v737_v19 = vand.u32 2147483647, %v727_v12  ;;  %vm733_vm8 = vweird.f32 %v727_v12 }
 0xbc2   :  { %v740_v21 = vor.u32 1.1754944e-38, %v739_v17  ;;  %vm738_vm10 = vcmp.eq.f32.partialorder %v737_v19, 8.507059e+37 }
 0xbc6   :  { %v903_v39 = vpop.eup %902 }
 0xbc7   :  { %v729_v14 = vmul.f32 %v903_v39, %v727_v12  ;;  %vm734_vm7 = vweird.f32 %v903_v39 }
 0xbc8   :  { %vm735_vm9 = vmor %vm733_vm8, %vm734_vm7 }
 0xbc9   :  { %v730_v16 = vsub.f32 1.0, %v729_v14 }
 0xbcb   :  { %v731_v18 = vmul.f32 %v903_v39, %v730_v16 }
 0xbcd   :  { %v732_v20 = vadd.f32 %v903_v39, %v731_v18 }
 0xbcf   :  { %v736_v22 = vsel %vm735_vm9, %v903_v39, %v732_v20 }
 0xbd0   :  { %v741_v23 = vsel %vm738_vm10, %v740_v21, %v736_v22 }
 0xbd1   :  { %749 = vrot.lane.b32.xlu2 %v741_v23, %s995_s0  ;;  %743 = vrot.lane.b32.xlu1 %v741_v23, %s996_s2 }
 0xc2b   :  { %v750_v29 = vpop.permute.xlu2 %749 }
 0xc2c   :  { %v753_v30 = vsub.f32 1.0, %v750_v29  ;;  %v755_v33 = vmul.f32 %v750_v29, %v676_v31 }
 0xc43   :  { %v744_v25 = vpop.permute.xlu1 %743 }
 0xc44   :  { %v746_v26 = vmul.f32 %v745_v24, %v744_v25 }
 0xc46   :  { %v747_v27 = vadd.f32 %v746_v26, %v700_v15 }
 0xc48   :  { %904 = vtanh.f32 %v747_v27 }
 0xc4e   :  { %v905_v28 = vpop.eup %904 }
 0xc4f   :  { %751 = vrot.lane.b32.xlu1 %v905_v28, %s998_s16 }
 0xcc1   :  { %v752_v32 = vpop.permute.xlu1 %751 }
 0xcc2   :  { %v754_v34 = vmul.f32 %v753_v30, %v752_v32 }
 0xcc4   :  { %v756_v57 = vadd.f32 %v755_v33, %v754_v34 }
 0xcc6   :  { %v757_v38 = vsel %vm109_vm6, %v756_v57, 0.0  ;;  %vm789_vm6 = vcmask 7168  }
 0xcc7   :  { %v762_v41 = vmul.f32 %v856_v36, %v757_v38 }
 0xcc9   :  { %763 = vadd.xlane.f32.xlu2 %v762_v41 }
 0xd3c   :  { %v764_v43 = vpop.xlane.xlu2 %763 }
 0xd3d   :  { %v769_v40 = vadd.f32 %v857_v42, %v764_v43 }
 0xd3f   :  { %v828_v44 = vmul.f32 -1.442695, %v769_v40 }
 0xd41   :  { %906 = vpow2.f32 %v828_v44 }
 0xd47   :  { %v907_v45 = vpop.eup %906 }
 0xd48   :  { %v773_v46 = vadd.f32 1.0, %v907_v45 }
 0xd4a   :  { %908 = vrcp.f32 %v773_v46  ;;  %v785_v50 = vand.u32 2147483648, %v773_v46  ;;  %v783_v52 = vand.u32 2147483647, %v773_v46  ;;  %vm779_vm12 = vweird.f32 %v773_v46 }
 0xd4c   :  { %v786_v37 = vor.u32 1.1754944e-38, %v785_v50  ;;  %vm784_vm14 = vcmp.eq.f32.partialorder %v783_v52, 8.507059e+37 }
 0xd50   :  { %v909_v47 = vpop.eup %908 }
 0xd51   :  { %v775_v48 = vmul.f32 %v909_v47, %v773_v46  ;;  %vm780_vm11 = vweird.f32 %v909_v47 }
 0xd52   :  { %vm781_vm13 = vmor %vm779_vm12, %vm780_vm11 }
 0xd53   :  { %v776_v49 = vsub.f32 1.0, %v775_v48 }
 0xd55   :  { %v777_v51 = vmul.f32 %v909_v47, %v776_v49 }
 0xd57   :  { %v778_v53 = vadd.f32 %v909_v47, %v777_v51 }
 0xd59   :  { %v782_v54 = vsel %vm781_vm13, %v909_v47, %v778_v53 }
 0xd5a   :  { %v787_v55 = vsel %vm784_vm14, %v786_v37, %v782_v54 }
 0xd5b   :  { %790 = vst.msk [vmem:[%s1486_s6] sm:$0xff] %vm789_vm6, %v787_v55 }
 0xd5c   :  { %795 = vsyncpa [#allocation4], 1 }
 0xd5d   :  { %796 = vsyncpa [#allocation6], 1 }

</bundles_post_ra>
